<compile_context>
chip_gen: v6e
topology: v6e:2x2x1
jax: 0.10.0
libtpu: 0.0.40
codegen_flags: <defaults>
</compile_context>

<pallas_src>
import jax
import jax.numpy as jnp
from jax.experimental import pallas as pl
from jax.experimental.pallas import tpu as pltpu

IN_DIM = 28 * 28   # 784
HID = 512
OUT_DIM = 10
OUT_PAD = 128      # lane-dense output stores; sliced back to 10 in the wrapper


def _round_up(x, m):
    return (x + m - 1) // m * m


def _choose_batch_tiling(B):
    """Pick (TB, B_pad): TB a multiple of 8, minimal padded work, >=2 grid tiles
    when possible so both v7x TensorCores are busy on the 'parallel' batch axis."""
    B8 = _round_up(max(B, 1), 8)
    best = None
    for tb in (1024, 512, 256, 128, 64, 32, 16, 8):
        if tb > B8:
            continue
        b_pad = _round_up(B8, tb)
        n = b_pad // tb
        # Cost model: padded rows dominate (weights are VMEM-resident, x/out DMA and
        # MXU work scale with b_pad); each grid step adds ~0.35us ~= 64 rows of work.
        cost = n * (tb + 64)
        key = (cost, -tb)
        if best is None or key < best[0]:
            best = (key, tb, b_pad)
    _, tb, b_pad = best
    # Megacore (v7x): guarantee at least 2 batch tiles when the tile can be halved.
    if b_pad // tb == 1 and tb % 16 == 0:
        tb //= 2
    return tb, b_pad


def mlp_kernel(x_ref, w1_ref, b1_ref, w2_ref, b2_ref, w3_ref, b3_ref, o_ref):
    # x tile arrives as f32 straight from HBM; cast to bf16 on the VPU (cheap,
    # hidden under the MXU) to hit the native bf16 matmul path.
    x = x_ref[...].astype(jnp.bfloat16)
    # Layer 1: (TB, 784) @ (784, 512) + b1, ReLU. bf16 operands, f32 accumulation.
    h1 = jnp.dot(x, w1_ref[...], preferred_element_type=jnp.float32)
    h1 = jnp.maximum(h1 + b1_ref[...], 0.0).astype(jnp.bfloat16)
    # Layer 2: (TB, 512) @ (512, 512) + b2, ReLU.
    h2 = jnp.dot(h1, w2_ref[...], preferred_element_type=jnp.float32)
    h2 = jnp.maximum(h2 + b2_ref[...], 0.0).astype(jnp.bfloat16)
    # Layer 3: (TB, 512) @ (512, 128) + b3 (valid logits live in [:, :10]).
    logits = jnp.dot(h2, w3_ref[...], preferred_element_type=jnp.float32)
    o_ref[...] = (logits + b3_ref[...]).astype(o_ref.dtype)


def prepare_params(w1, b1, w2, b2, w3, b3):
    """One-time weight cast/pad. Call once; pass the result to every forward call
    so no per-call weight traffic happens outside the kernel."""
    w1_p = w1.astype(jnp.bfloat16)                                   # (784, 512)
    w2_p = w2.astype(jnp.bfloat16)                                   # (512, 512)
    w3_p = jnp.zeros((HID, OUT_PAD), jnp.bfloat16).at[:, :OUT_DIM].set(
        w3.astype(jnp.bfloat16))                                     # (512, 128)
    b1_p = b1.reshape(1, HID).astype(jnp.float32)
    b2_p = b2.reshape(1, HID).astype(jnp.float32)
    b3_p = jnp.zeros((1, OUT_PAD), jnp.float32).at[:, :OUT_DIM].set(
        b3.reshape(1, OUT_DIM))
    return w1_p, b1_p, w2_p, b2_p, w3_p, b3_p


@jax.jit
def neural_network_forward(x, prepared):
    """x: (B, 28, 28) float32, prepared = prepare_params(...) -> logits (B, 10) f32."""
    w1_p, b1_p, w2_p, b2_p, w3_p, b3_p = prepared
    B = x.shape[0]
    x_flat = x.reshape(B, IN_DIM)                       # nn.Flatten()

    TB, B_pad = _choose_batch_tiling(B)
    n_tiles = B_pad // TB
    if B_pad != B:
        x_flat = jnp.pad(x_flat, ((0, B_pad - B), (0, 0)))

    const = lambda shape: pl.BlockSpec(shape, lambda i: (0, 0))

    flops = 2 * B_pad * (IN_DIM * HID + HID * HID + HID * OUT_PAD)
    bytes_accessed = (
        B_pad * IN_DIM * 4                      # x tiles (f32)
        + w1_p.size * 2 + w2_p.size * 2 + w3_p.size * 2
        + b1_p.size * 4 + b2_p.size * 4 + b3_p.size * 4
        + B_pad * OUT_PAD * 4)                  # padded logits out

    out = pl.pallas_call(
        mlp_kernel,
        out_shape=jax.ShapeDtypeStruct((B_pad, OUT_PAD), jnp.float32),
        grid=(n_tiles,),
        in_specs=[
            pl.BlockSpec((TB, IN_DIM), lambda i: (i, 0)),   # x tile (f32), pipelined
            const((IN_DIM, HID)),                           # w1: VMEM-resident
            const((1, HID)),                                # b1
            const((HID, HID)),                              # w2
            const((1, HID)),                                # b2
            const((HID, OUT_PAD)),                          # w3 (padded N)
            const((1, OUT_PAD)),                            # b3 (padded N)
        ],
        out_specs=pl.BlockSpec((TB, OUT_PAD), lambda i: (i, 0)),
        compiler_params=pltpu.CompilerParams(
            dimension_semantics=("parallel",),   # megacore sharding on v7x
            vmem_limit_bytes=32 << 20,           # working set < ~16 MB even at TB=1024
        ),
        cost_estimate=pl.CostEstimate(
            flops=flops, transcendentals=0, bytes_accessed=bytes_accessed),
    )(x_flat, w1_p, b1_p, w2_p, b2_p, w3_p, b3_p)

    return out[:B, :OUT_DIM]


def init_params(key):
    """Deterministic init mimicking nn.Linear default (uniform +/- 1/sqrt(fan_in))."""
    def linear(k, fan_in, fan_out):
        kw, kb = jax.random.split(k)
        bound = 1.0 / jnp.sqrt(fan_in)
        # stored as (in, out) so the kernel computes x @ W + b  (== PyTorch x @ W_t.T + b)
        w = jax.random.uniform(kw, (fan_in, fan_out), jnp.float32, -bound, bound)
        b = jax.random.uniform(kb, (1, fan_out), jnp.float32, -bound, bound)
        return w, b

    k1, k2, k3 = jax.random.split(key, 3)
    w1, b1 = linear(k1, IN_DIM, HID)
    w2, b2 = linear(k2, HID, HID)
    w3, b3 = linear(k3, HID, OUT_DIM)
    return w1, b1, w2, b2, w3, b3


if __name__ == "__main__":
    key = jax.random.PRNGKey(0)
    k_params, k_x = jax.random.split(key)

    params = init_params(k_params)
    prepared = prepare_params(*params)   # one-time weight cast/pad, outside per-call path

    # batch=2 images of shape (28, 28), like torch.rand(B, 28, 28)
    x = jax.random.uniform(k_x, (2, 28, 28), jnp.float32)

    logits = neural_network_forward(x, prepared)
    logits = jax.block_until_ready(logits)

    # True f32 reference (PyTorch semantics). The kernel uses bf16 weights/activations
    # with f32 accumulation, so allow a few-e-3 deviation with generous margin.
    w1, b1, w2, b2, w3, b3 = params
    xf = x.reshape(-1, IN_DIM)
    ref = jnp.maximum(xf @ w1 + b1, 0.0)
    ref = jnp.maximum(ref @ w2 + b2, 0.0)
    ref = ref @ w3 + b3

    assert logits.shape == (2, OUT_DIM)
    assert jnp.allclose(logits, ref, atol=5e-2, rtol=5e-2), \
        float(jnp.max(jnp.abs(logits - ref)))

    print("KERNEL_OK")
</pallas_src>

<mosaic_0001>
module attributes {stable_mosaic.version = 11 : i64} {
  func.func @mlp_kernel(%arg0: i32, %arg1: memref<8x784xf32, #tpu.memory_space<vmem>>, %arg2: memref<784x512xbf16, #tpu.memory_space<vmem>>, %arg3: memref<1x512xf32, #tpu.memory_space<vmem>>, %arg4: memref<512x512xbf16, #tpu.memory_space<vmem>>, %arg5: memref<1x512xf32, #tpu.memory_space<vmem>>, %arg6: memref<512x128xbf16, #tpu.memory_space<vmem>>, %arg7: memref<1x128xf32, #tpu.memory_space<vmem>>, %arg8: memref<8x128xf32, #tpu.memory_space<vmem>>) attributes {dimension_semantics = [#tpu.dimension_semantics<parallel>], iteration_bounds = array<i64: 1>, scalar_prefetch = 0 : i64, scratch_operands = 0 : i64, tpu.core_type = #tpu.core_type<tc>, window_params = [{transform_indices = @transform_0, window_bounds = array<i64: 8, 784>}, {pipeline_mode = #tpu.pipeline_mode<synchronous>, transform_indices = @transform_1, window_bounds = array<i64: 784, 512>}, {pipeline_mode = #tpu.pipeline_mode<synchronous>, transform_indices = @transform_2, window_bounds = array<i64: 1, 512>}, {pipeline_mode = #tpu.pipeline_mode<synchronous>, transform_indices = @transform_3, window_bounds = array<i64: 512, 512>}, {pipeline_mode = #tpu.pipeline_mode<synchronous>, transform_indices = @transform_4, window_bounds = array<i64: 1, 512>}, {pipeline_mode = #tpu.pipeline_mode<synchronous>, transform_indices = @transform_5, window_bounds = array<i64: 512, 128>}, {pipeline_mode = #tpu.pipeline_mode<synchronous>, transform_indices = @transform_6, window_bounds = array<i64: 1, 128>}, {transform_indices = @transform_7, window_bounds = array<i64: 8, 128>}]} {
    %c0 = arith.constant 0 : index
    %c0_0 = arith.constant 0 : index
    %0 = vector.load %arg1[%c0, %c0_0] : memref<8x784xf32, #tpu.memory_space<vmem>>, vector<8x784xf32>
    %1 = arith.truncf %0 : vector<8x784xf32> to vector<8x784xbf16>
    %c0_1 = arith.constant 0 : index
    %c0_2 = arith.constant 0 : index
    %2 = vector.load %arg2[%c0_1, %c0_2] : memref<784x512xbf16, #tpu.memory_space<vmem>>, vector<784x512xbf16>
    %cst = arith.constant dense<0.000000e+00> : vector<8x512xf32>
    %3 = tpu.matmul %1, %2, %cst {dimension_numbers = #tpu.dot_dimension_numbers<[1], [0], [0], [1], [0, 0, 1, 1], [], []>} : vector<8x784xbf16>, vector<784x512xbf16>, vector<8x512xf32> -> vector<8x512xf32>
    %c0_3 = arith.constant 0 : index
    %c0_4 = arith.constant 0 : index
    %4 = vector.load %arg3[%c0_3, %c0_4] : memref<1x512xf32, #tpu.memory_space<vmem>>, vector<1x512xf32>
    %5 = vector.broadcast %4 : vector<1x512xf32> to vector<8x512xf32>
    %6 = arith.addf %3, %5 : vector<8x512xf32>
    %cst_5 = arith.constant 0.000000e+00 : f32
    %7 = vector.broadcast %cst_5 : f32 to vector<8x512xf32>
    %8 = arith.maximumf %6, %7 : vector<8x512xf32>
    %9 = arith.truncf %8 : vector<8x512xf32> to vector<8x512xbf16>
    %c0_6 = arith.constant 0 : index
    %c0_7 = arith.constant 0 : index
    %10 = vector.load %arg4[%c0_6, %c0_7] : memref<512x512xbf16, #tpu.memory_space<vmem>>, vector<512x512xbf16>
    %cst_8 = arith.constant dense<0.000000e+00> : vector<8x512xf32>
    %11 = tpu.matmul %9, %10, %cst_8 {dimension_numbers = #tpu.dot_dimension_numbers<[1], [0], [0], [1], [0, 0, 1, 1], [], []>} : vector<8x512xbf16>, vector<512x512xbf16>, vector<8x512xf32> -> vector<8x512xf32>
    %c0_9 = arith.constant 0 : index
    %c0_10 = arith.constant 0 : index
    %12 = vector.load %arg5[%c0_9, %c0_10] : memref<1x512xf32, #tpu.memory_space<vmem>>, vector<1x512xf32>
    %13 = vector.broadcast %12 : vector<1x512xf32> to vector<8x512xf32>
    %14 = arith.addf %11, %13 : vector<8x512xf32>
    %cst_11 = arith.constant 0.000000e+00 : f32
    %15 = vector.broadcast %cst_11 : f32 to vector<8x512xf32>
    %16 = arith.maximumf %14, %15 : vector<8x512xf32>
    %17 = arith.truncf %16 : vector<8x512xf32> to vector<8x512xbf16>
    %c0_12 = arith.constant 0 : index
    %c0_13 = arith.constant 0 : index
    %18 = vector.load %arg6[%c0_12, %c0_13] : memref<512x128xbf16, #tpu.memory_space<vmem>>, vector<512x128xbf16>
    %cst_14 = arith.constant dense<0.000000e+00> : vector<8x128xf32>
    %19 = tpu.matmul %17, %18, %cst_14 {dimension_numbers = #tpu.dot_dimension_numbers<[1], [0], [0], [1], [0, 0, 1, 1], [], []>} : vector<8x512xbf16>, vector<512x128xbf16>, vector<8x128xf32> -> vector<8x128xf32>
    %c0_15 = arith.constant 0 : index
    %c0_16 = arith.constant 0 : index
    %20 = vector.load %arg7[%c0_15, %c0_16] : memref<1x128xf32, #tpu.memory_space<vmem>>, vector<1x128xf32>
    %21 = vector.broadcast %20 : vector<1x128xf32> to vector<8x128xf32>
    %22 = arith.addf %19, %21 : vector<8x128xf32>
    %c0_17 = arith.constant 0 : index
    %c0_18 = arith.constant 0 : index
    %23 = vector.load %arg8[%c0_17, %c0_18] : memref<8x128xf32, #tpu.memory_space<vmem>>, vector<8x128xf32>
    tpu.vector_store %arg8[%c0_17, %c0_18], %22 {strides = array<i32>} : memref<8x128xf32, #tpu.memory_space<vmem>>, vector<8x128xf32>,
    return
  }
  func.func @transform_0(%arg0: i32) -> (i32, i32) {
    %c0_i32 = arith.constant 0 : i32
    %c0_i32_0 = arith.constant 0 : i32
    return %arg0, %c0_i32 : i32, i32
  }
  func.func @transform_1(%arg0: i32) -> (i32, i32) {
    %c0_i32 = arith.constant 0 : i32
    %c0_i32_0 = arith.constant 0 : i32
    %c0_i32_1 = arith.constant 0 : i32
    return %c0_i32, %c0_i32_0 : i32, i32
  }
  func.func @transform_2(%arg0: i32) -> (i32, i32) {
    %c0_i32 = arith.constant 0 : i32
    %c0_i32_0 = arith.constant 0 : i32
    %c0_i32_1 = arith.constant 0 : i32
    return %c0_i32, %c0_i32_0 : i32, i32
  }
  func.func @transform_3(%arg0: i32) -> (i32, i32) {
    %c0_i32 = arith.constant 0 : i32
    %c0_i32_0 = arith.constant 0 : i32
    %c0_i32_1 = arith.constant 0 : i32
    return %c0_i32, %c0_i32_0 : i32, i32
  }
  func.func @transform_4(%arg0: i32) -> (i32, i32) {
    %c0_i32 = arith.constant 0 : i32
    %c0_i32_0 = arith.constant 0 : i32
    %c0_i32_1 = arith.constant 0 : i32
    return %c0_i32, %c0_i32_0 : i32, i32
  }
  func.func @transform_5(%arg0: i32) -> (i32, i32) {
    %c0_i32 = arith.constant 0 : i32
    %c0_i32_0 = arith.constant 0 : i32
    %c0_i32_1 = arith.constant 0 : i32
    return %c0_i32, %c0_i32_0 : i32, i32
  }
  func.func @transform_6(%arg0: i32) -> (i32, i32) {
    %c0_i32 = arith.constant 0 : i32
    %c0_i32_0 = arith.constant 0 : i32
    %c0_i32_1 = arith.constant 0 : i32
    return %c0_i32, %c0_i32_0 : i32, i32
  }
  func.func @transform_7(%arg0: i32) -> (i32, i32) {
    %c0_i32 = arith.constant 0 : i32
    %c0_i32_0 = arith.constant 0 : i32
    return %arg0, %c0_i32 : i32, i32
  }
}

</mosaic_0001>

<bundles_post_ra>
// kernel: neural_network_forward.1
= control target key start
LH: loop header
LB: loop body
LE: loop exit
PB: predicated region body
PF: predicated region fallthrough
CT: control target
= control target key end

     0   :  { %12 = vsyncpa [#allocation3], 0  ;;  %s4143_s0 = inlined_call_operand.vmem [shape: f32[8,784], index: 0, kind: input, shape index: {}]   ;;  %s4144_s1 = inlined_call_operand.hbm [shape: bf16[784,512], index: 1, kind: input, shape index: {}]   ;;  %s4145_s2 = inlined_call_operand.vmem [shape: f32[1,512], index: 2, kind: input, shape index: {}]   ;;  %s4146_s3 = inlined_call_operand.hbm [shape: bf16[512,512], index: 3, kind: input, shape index: {}]   ;;  %s4147_s4 = inlined_call_operand.vmem [shape: f32[1,512], index: 4, kind: input, shape index: {}]   ;;  %s4148_s5 = inlined_call_operand.vmem [shape: bf16[512,128], index: 5, kind: input, shape index: {}]   ;;  %s4149_s6 = inlined_call_operand.vmem [shape: f32[1,128], index: 6, kind: input, shape index: {}]   ;;  %s4150_s7 = inlined_call_operand.vmem [shape: f32[8,128], index: 7, kind: output, shape index: {}]  }
   0x1   :  { %13 = vsyncpa [#allocation5], 0  ;;  %s3889_s24 = smov [#allocation2]  }
   0x2   :  { %s21_s25 = sshll.u32 %s3889_s24, 4  ;;  %s22_s25 = int_to_ptr.vmem [resolvable:$true] %s21_s25 }
   0x3   :  { %s3853_s26 = scalar_lea.vmem %s22_s25, 25088  ;;  %p3858_p1 = scmp.lt.s32.totalorder %s22_s25, %s22_s25 }
   0x4   :  { %p3854_p0 = scmp.ne.s32.totalorder %s22_s25, %s3853_s26  ;;  %p3859_p2 = scmp.lt.s32.totalorder %s3853_s26, %s3853_s26 }
   0x6   :  { %p3860_p3 = por %p3859_p2, %p3858_p1 }
   0x8   :  { %p3861_p4 = pnand %p3860_p3, %p3854_p0 }
   0xa   :  { %3864 = shalt.err (!%p3861_p4)
}
   0xb   :  { %s3890_s27 = smov 256   ;;  %s3891_s28 = smov 16  }
   0xc   :  { %27 = dma.hbm_to_vmem [thread:$0]  %s4144_s1, 25088, %s22_s25, [#allocation3], %s3890_s27, %s3890_s27, %s3891_s28  }
   0xd   :  { %s3892_s8 = smov [#allocation4]  }
   0xe   :  { %s35_s9 = sshll.u32 %s3892_s8, 4  ;;  %s36_s9 = int_to_ptr.vmem [resolvable:$true] %s35_s9 }
   0xf   :  { %s3873_s10 = scalar_lea.vmem %s36_s9, 16384  ;;  %p3878_p6 = scmp.lt.s32.totalorder %s36_s9, %s36_s9 }
  0x10   :  { %p3874_p5 = scmp.ne.s32.totalorder %s36_s9, %s3873_s10  ;;  %p3879_p7 = scmp.lt.s32.totalorder %s3873_s10, %s3873_s10 }
  0x12   :  { %p3880_p8 = por %p3879_p7, %p3878_p6 }
  0x14   :  { %p3881_p9 = pnand %p3880_p8, %p3874_p5 }
  0x16   :  { %3884 = shalt.err (!%p3881_p9)
}
  0x17   :  { %41 = dma.hbm_to_vmem [thread:$0]  %s4146_s3, 16384, %s36_s9, [#allocation5], %s3890_s27, %s3890_s27, %s3891_s28  }
  0x18   :  { %3885 = dma.done.wait [#allocation3], 25088  }
  0x19   :  { %3886 = vsyncadd [#allocation3], 4294942208 }
  0x1a   :  { %3887 = dma.done.wait [#allocation5], 16384  }
  0x1b   :  { %3888 = vsyncadd [#allocation5], 4294950912  ;;  %v3327_v0 = vld [vmem:[#allocation2 + $0xe4] ss:$16 sps:$4 sm:$0xff]   ;;  %v3331_v2 = vld [vmem:[#allocation2 + $0xe0] ss:$16 sps:$4 sm:$0xff]  }
  0x1c   :  { %v3329_v1 = vld [vmem:[#allocation2 + $0x2e4] ss:$16 sps:$4 sm:$0xff]   ;;  %1271 = vmatprep.subr.bf16.mxu0 %v3327_v0  ;;  %v3332_v3 = vld [vmem:[#allocation2 + $0x2e0] ss:$16 sps:$4 sm:$0xff]   ;;  %v56_v46 = vld [vmem:[%s4143_s0 + $0x8] sm:$0xff]  ;;  %vm1267_vm0 = vcmask 130048  }
  0x1d   :  { %1312 = vmatprep.subr.bf16.mxu1 %v3329_v1  ;;  %v3333_v4 = vld [vmem:[#allocation2 + $0xc4] ss:$16 sps:$4 sm:$0xff]   ;;  %1272 = vmatpush1.bf16.msra.mxu0 %v3331_v2  ;;  %v3337_v6 = vld [vmem:[#allocation2 + $0xc0] ss:$16 sps:$4 sm:$0xff]   ;;  %v3943_v49 = vpack.c.bf16 %v56_v46, %v56_v46  ;;  %v58_v50 = vld [vmem:[%s4143_s0 + $0x18] sm:$0xff] }
  0x1e   :  { %1313 = vmatpush1.bf16.msra.mxu1 %v3332_v3  ;;  %v3335_v5 = vld [vmem:[#allocation2 + $0x2c4] ss:$16 sps:$4 sm:$0xff]   ;;  %1273 = vmatprep.subr.bf16.mxu0 %v3333_v4  ;;  %v3338_v7 = vld [vmem:[#allocation2 + $0x2c0] ss:$16 sps:$4 sm:$0xff]   ;;  %v3948_v52 = vpack.c.bf16 %v58_v50, %v58_v50 }
  0x1f   :  { %1314 = vmatprep.subr.bf16.mxu1 %v3335_v5  ;;  %v3339_v8 = vld [vmem:[#allocation2 + $0xa4] ss:$16 sps:$4 sm:$0xff]   ;;  %v3343_v10 = vld [vmem:[#allocation2 + $0xa0] ss:$16 sps:$4 sm:$0xff]   ;;  %1303 = vmatprep.mubr.bf16.mxu0 %v3943_v49 }
  0x20   :  { %v3341_v9 = vld [vmem:[#allocation2 + $0x2a4] ss:$16 sps:$4 sm:$0xff]   ;;  %v3344_v11 = vld [vmem:[#allocation2 + $0x2a0] ss:$16 sps:$4 sm:$0xff]   ;;  %1344 = vmatprep.mubr.bf16.mxu1 %v3948_v52 }
  0x21   :  { %1274 = vmatpush1.bf16.msra.mxu0 %v3337_v6  ;;  %v3345_v12 = vld [vmem:[#allocation2 + $0x84] ss:$16 sps:$4 sm:$0xff]   ;;  %v3349_v14 = vld [vmem:[#allocation2 + $0x80] ss:$16 sps:$4 sm:$0xff]  }
  0x22   :  { %1315 = vmatpush1.bf16.msra.mxu1 %v3338_v7  ;;  %1275 = vmatprep.subr.bf16.mxu0 %v3339_v8  ;;  %v3347_v13 = vld [vmem:[#allocation2 + $0x284] ss:$16 sps:$4 sm:$0xff]   ;;  %v3350_v15 = vld [vmem:[#allocation2 + $0x280] ss:$16 sps:$4 sm:$0xff]  }
  0x23   :  { %1316 = vmatprep.subr.bf16.mxu1 %v3341_v9  ;;  %v3351_v16 = vld [vmem:[#allocation2 + $0x64] ss:$16 sps:$4 sm:$0xff]   ;;  %v3355_v18 = vld [vmem:[#allocation2 + $0x60] ss:$16 sps:$4 sm:$0xff]  }
  0x24   :  { %v3353_v17 = vld [vmem:[#allocation2 + $0x264] ss:$16 sps:$4 sm:$0xff]   ;;  %v3356_v19 = vld [vmem:[#allocation2 + $0x260] ss:$16 sps:$4 sm:$0xff]  }
  0x25   :  { %1276 = vmatpush1.bf16.msra.mxu0 %v3343_v10  ;;  %v3357_v20 = vld [vmem:[#allocation2 + $0x44] ss:$16 sps:$4 sm:$0xff]   ;;  %v3361_v22 = vld [vmem:[#allocation2 + $0x40] ss:$16 sps:$4 sm:$0xff]  }
  0x26   :  { %1317 = vmatpush1.bf16.msra.mxu1 %v3344_v11  ;;  %1277 = vmatprep.subr.bf16.mxu0 %v3345_v12  ;;  %v3359_v21 = vld [vmem:[#allocation2 + $0x244] ss:$16 sps:$4 sm:$0xff]   ;;  %v3362_v23 = vld [vmem:[#allocation2 + $0x240] ss:$16 sps:$4 sm:$0xff]  }
  0x27   :  { %1318 = vmatprep.subr.bf16.mxu1 %v3347_v13  ;;  %v3363_v24 = vld [vmem:[#allocation2 + $0x24] ss:$16 sps:$4 sm:$0xff]   ;;  %v3367_v26 = vld [vmem:[#allocation2 + $0x20] ss:$16 sps:$4 sm:$0xff]   ;;  %v3434_v13 = vld [vmem:[#allocation2 + $0xec] ss:$16 sps:$4 sm:$0xff]  }
  0x28   :  { %v3365_v25 = vld [vmem:[#allocation2 + $0x224] ss:$16 sps:$4 sm:$0xff]   ;;  %v3368_v27 = vld [vmem:[#allocation2 + $0x220] ss:$16 sps:$4 sm:$0xff]  }
  0x29   :  { %1278 = vmatpush1.bf16.msra.mxu0 %v3349_v14  ;;  %v3369_v28 = vld [vmem:[#allocation2 + $0x4] ss:$16 sps:$4 sm:$0xff]   ;;  %v3373_v30 = vld [vmem:[#allocation2] ss:$16 sps:$4 sm:$0xff]  }
  0x2a   :  { %1319 = vmatpush1.bf16.msra.mxu1 %v3350_v15  ;;  %1279 = vmatprep.subr.bf16.mxu0 %v3351_v16  ;;  %v3371_v29 = vld [vmem:[#allocation2 + $0x204] ss:$16 sps:$4 sm:$0xff]   ;;  %v3374_v31 = vld [vmem:[#allocation2 + $0x200] ss:$16 sps:$4 sm:$0xff]   ;;  %v3893_v16 = vmov 0  }
  0x2b   :  { %1320 = vmatprep.subr.bf16.mxu1 %v3353_v17  ;;  %v3375_v32 = vld [vmem:[#allocation2 + $0x1e4] ss:$16 sps:$4 sm:$0xff]   ;;  %v3379_v34 = vld [vmem:[#allocation2 + $0x1e0] ss:$16 sps:$4 sm:$0xff]  }
  0x2c   :  { %v3377_v33 = vld [vmem:[#allocation2 + $0x3e4] ss:$16 sps:$4 sm:$0xff]   ;;  %v3380_v35 = vld [vmem:[#allocation2 + $0x3e0] ss:$16 sps:$4 sm:$0xff]  }
  0x2d   :  { %1280 = vmatpush1.bf16.msra.mxu0 %v3355_v18  ;;  %v3381_v36 = vld [vmem:[#allocation2 + $0x1c4] ss:$16 sps:$4 sm:$0xff]   ;;  %v3385_v38 = vld [vmem:[#allocation2 + $0x1c0] ss:$16 sps:$4 sm:$0xff]   ;;  %v3432_v18 = vld [vmem:[#allocation2 + $0xe8] ss:$16 sps:$4 sm:$0xff]  }
  0x2e   :  { %1321 = vmatpush1.bf16.msra.mxu1 %v3356_v19  ;;  %1281 = vmatprep.subr.bf16.mxu0 %v3357_v20  ;;  %v3383_v37 = vld [vmem:[#allocation2 + $0x3c4] ss:$16 sps:$4 sm:$0xff]   ;;  %v3386_v39 = vld [vmem:[#allocation2 + $0x3c0] ss:$16 sps:$4 sm:$0xff]  }
  0x2f   :  { %1322 = vmatprep.subr.bf16.mxu1 %v3359_v21  ;;  %v3387_v40 = vld [vmem:[#allocation2 + $0x1a4] ss:$16 sps:$4 sm:$0xff]   ;;  %v3391_v42 = vld [vmem:[#allocation2 + $0x1a0] ss:$16 sps:$4 sm:$0xff]   ;;  %v3440_v21 = vld [vmem:[#allocation2 + $0xcc] ss:$16 sps:$4 sm:$0xff]  }
  0x30   :  { %v3389_v41 = vld [vmem:[#allocation2 + $0x3a4] ss:$16 sps:$4 sm:$0xff]   ;;  %v3392_v43 = vld [vmem:[#allocation2 + $0x3a0] ss:$16 sps:$4 sm:$0xff]  }
  0x31   :  { %1282 = vmatpush1.bf16.msra.mxu0 %v3361_v22  ;;  %v3393_v44 = vld [vmem:[#allocation2 + $0x184] ss:$16 sps:$4 sm:$0xff]   ;;  %v3397_v47 = vld [vmem:[#allocation2 + $0x180] ss:$16 sps:$4 sm:$0xff]  }
  0x32   :  { %1323 = vmatpush1.bf16.msra.mxu1 %v3362_v23  ;;  %1283 = vmatprep.subr.bf16.mxu0 %v3363_v24  ;;  %v3395_v45 = vld [vmem:[#allocation2 + $0x384] ss:$16 sps:$4 sm:$0xff]   ;;  %v3398_v48 = vld [vmem:[#allocation2 + $0x380] ss:$16 sps:$4 sm:$0xff]   ;;  %v3438_v23 = vld [vmem:[#allocation2 + $0xc8] ss:$16 sps:$4 sm:$0xff]  }
  0x33   :  { %1324 = vmatprep.subr.bf16.mxu1 %v3365_v25  ;;  %v3399_v51 = vld [vmem:[#allocation2 + $0x164] ss:$16 sps:$4 sm:$0xff]   ;;  %v3403_v54 = vld [vmem:[#allocation2 + $0x160] ss:$16 sps:$4 sm:$0xff]   ;;  %v3446_v25 = vld [vmem:[#allocation2 + $0xac] ss:$16 sps:$4 sm:$0xff]  }
  0x34   :  { %v3401_v53 = vld [vmem:[#allocation2 + $0x364] ss:$16 sps:$4 sm:$0xff]   ;;  %v3404_v55 = vld [vmem:[#allocation2 + $0x360] ss:$16 sps:$4 sm:$0xff]  }
  0x35   :  { %1284 = vmatpush1.bf16.msra.mxu0 %v3367_v26  ;;  %v3405_v56 = vld [vmem:[#allocation2 + $0x144] ss:$16 sps:$4 sm:$0xff]   ;;  %v3409_v58 = vld [vmem:[#allocation2 + $0x140] ss:$16 sps:$4 sm:$0xff]  }
  0x36   :  { %1325 = vmatpush1.bf16.msra.mxu1 %v3368_v27  ;;  %1285 = vmatprep.subr.bf16.mxu0 %v3369_v28  ;;  %v3407_v57 = vld [vmem:[#allocation2 + $0x344] ss:$16 sps:$4 sm:$0xff]   ;;  %v3410_v59 = vld [vmem:[#allocation2 + $0x340] ss:$16 sps:$4 sm:$0xff]   ;;  %v3444_v27 = vld [vmem:[#allocation2 + $0xa8] ss:$16 sps:$4 sm:$0xff]  }
  0x37   :  { %1326 = vmatprep.subr.bf16.mxu1 %v3371_v29  ;;  %v3411_v60 = vld [vmem:[#allocation2 + $0x124] ss:$16 sps:$4 sm:$0xff]   ;;  %v3415_v62 = vld [vmem:[#allocation2 + $0x120] ss:$16 sps:$4 sm:$0xff]   ;;  %v3452_v29 = vld [vmem:[#allocation2 + $0x8c] ss:$16 sps:$4 sm:$0xff]  }
  0x38   :  { %v3413_v61 = vld [vmem:[#allocation2 + $0x324] ss:$16 sps:$4 sm:$0xff]   ;;  %v3416_v63 = vld [vmem:[#allocation2 + $0x320] ss:$16 sps:$4 sm:$0xff]  }
  0x39   :  { %1286 = vmatpush1.bf16.msra.mxu0 %v3373_v30  ;;  %v3417_v0 = vld [vmem:[#allocation2 + $0x104] ss:$16 sps:$4 sm:$0xff]   ;;  %v3421_v2 = vld [vmem:[#allocation2 + $0x100] ss:$16 sps:$4 sm:$0xff]  }
  0x3a   :  { %1327 = vmatpush1.bf16.msra.mxu1 %v3374_v31  ;;  %1287 = vmatprep.subr.bf16.mxu0 %v3375_v32  ;;  %v3419_v1 = vld [vmem:[#allocation2 + $0x304] ss:$16 sps:$4 sm:$0xff]   ;;  %v3422_v3 = vld [vmem:[#allocation2 + $0x300] ss:$16 sps:$4 sm:$0xff]   ;;  %v3450_v31 = vld [vmem:[#allocation2 + $0x88] ss:$16 sps:$4 sm:$0xff]  }
  0x3b   :  { %1328 = vmatprep.subr.bf16.mxu1 %v3377_v33  ;;  %v55_v4 = vld [vmem:[%s4143_s0] sm:$0xff]  ;;  %v57_v5 = vld [vmem:[%s4143_s0 + $0x10] sm:$0xff]  ;;  %v3458_v33 = vld [vmem:[#allocation2 + $0x6c] ss:$16 sps:$4 sm:$0xff]  }
  0x3c   :  { %v3425_v6 = vld [vmem:[#allocation2 + $0x4e4] ss:$16 sps:$4 sm:$0xff]   ;;  %v3958_v8 = vpack.c.bf16 %v55_v4, %v55_v4  ;;  %v3960_v9 = vpack.c.bf16 %v57_v5, %v57_v5  ;;  %v3423_v10 = vld [vmem:[#allocation2 + $0x4e0] ss:$16 sps:$4 sm:$0xff]   ;;  %v3506_v4 = vld [vmem:[#allocation2 + $0x16c] ss:$16 sps:$4 sm:$0xff]  }
  0x3d   :  { %1288 = vmatpush2.bf16.msra.mxu0 %v3379_v34  ;;  %v3428_v7 = vld [vmem:[#allocation2 + $0x604] ss:$16 sps:$4 sm:$0xff]   ;;  %v3426_v11 = vld [vmem:[#allocation2 + $0x600] ss:$16 sps:$4 sm:$0xff]  }
  0x3e   :  { %1329 = vmatpush2.bf16.msra.mxu1 %v3380_v35  ;;  %1289 = vmatprep.subr.bf16.mxu0 %v3381_v36  ;;  %v3431_v12 = vld [vmem:[#allocation2 + $0x4c4] ss:$16 sps:$4 sm:$0xff]   ;;  %v3429_v14 = vld [vmem:[#allocation2 + $0x4c0] ss:$16 sps:$4 sm:$0xff]   ;;  %v60_v35 = vld [vmem:[%s4143_s0 + $0x28] sm:$0xff] }
  0x3f   :  { %1330 = vmatprep.subr.bf16.mxu1 %v3383_v37  ;;  %v61_v15 = vld [vmem:[%s4143_s0 + $0x30] sm:$0xff]  ;;  %v3976_v36 = vpack.c.bf16 %v60_v35, %v60_v35  ;;  %v3456_v37 = vld [vmem:[#allocation2 + $0x68] ss:$16 sps:$4 sm:$0xff]   ;;  %v3545_v35 = vld [vmem:[#allocation2 + $0x26c] ss:$16 sps:$4 sm:$0xff]  }
  0x40   :  { %v3437_v17 = vld [vmem:[#allocation2 + $0x4a4] ss:$16 sps:$4 sm:$0xff]   ;;  %v3968_v19 = vpack.c.bf16 %v61_v15, %v61_v15  ;;  %v3435_v20 = vld [vmem:[#allocation2 + $0x4a0] ss:$16 sps:$4 sm:$0xff]  }
  0x41   :  { %1290 = vmatpush2.bf16.msra.mxu0 %v3385_v38  ;;  %v3443_v22 = vld [vmem:[#allocation2 + $0x484] ss:$16 sps:$4 sm:$0xff]   ;;  %v3441_v24 = vld [vmem:[#allocation2 + $0x480] ss:$16 sps:$4 sm:$0xff]  }
  0x42   :  { %1331 = vmatpush2.bf16.msra.mxu1 %v3386_v39  ;;  %1291 = vmatprep.subr.bf16.mxu0 %v3387_v40  ;;  %v3449_v26 = vld [vmem:[#allocation2 + $0x464] ss:$16 sps:$4 sm:$0xff]   ;;  %v3447_v28 = vld [vmem:[#allocation2 + $0x460] ss:$16 sps:$4 sm:$0xff]   ;;  %v3464_v39 = vld [vmem:[#allocation2 + $0x4c] ss:$16 sps:$4 sm:$0xff]  }
  0x43   :  { %1332 = vmatprep.subr.bf16.mxu1 %v3389_v41  ;;  %v3455_v30 = vld [vmem:[#allocation2 + $0x444] ss:$16 sps:$4 sm:$0xff]   ;;  %v3453_v32 = vld [vmem:[#allocation2 + $0x440] ss:$16 sps:$4 sm:$0xff]   ;;  %v3462_v41 = vld [vmem:[#allocation2 + $0x48] ss:$16 sps:$4 sm:$0xff]  }
  0x44   :  { %v3461_v34 = vld [vmem:[#allocation2 + $0x424] ss:$16 sps:$4 sm:$0xff]   ;;  %v3459_v38 = vld [vmem:[#allocation2 + $0x420] ss:$16 sps:$4 sm:$0xff]  }
  0x45   :  { %1292 = vmatpush2.bf16.msra.mxu0 %v3391_v42  ;;  %v3467_v40 = vld [vmem:[#allocation2 + $0x404] ss:$16 sps:$4 sm:$0xff]   ;;  %v3465_v42 = vld [vmem:[#allocation2 + $0x400] ss:$16 sps:$4 sm:$0xff]  }
  0x46   :  { %1333 = vmatpush2.bf16.msra.mxu1 %v3392_v43  ;;  %1293 = vmatprep.subr.bf16.mxu0 %v3393_v44  ;;  %v3470_v43 = vld [vmem:[#allocation2 + $0x2c] ss:$16 sps:$4 sm:$0xff]   ;;  %v3473_v44 = vld [vmem:[#allocation2 + $0x5e4] ss:$16 sps:$4 sm:$0xff]   ;;  %v3471_v46 = vld [vmem:[#allocation2 + $0x5e0] ss:$16 sps:$4 sm:$0xff]  }
  0x47   :  { %1334 = vmatprep.subr.bf16.mxu1 %v3395_v45  ;;  %v3468_v45 = vld [vmem:[#allocation2 + $0x28] ss:$16 sps:$4 sm:$0xff]   ;;  %v3477_v50 = vld [vmem:[#allocation2 + $0x5c0] ss:$16 sps:$4 sm:$0xff]   ;;  %v3509_v5 = vld [vmem:[#allocation2 + $0x524] ss:$16 sps:$4 sm:$0xff]  }
  0x48   :  { %v59_v15 = vld [vmem:[%s4143_s0 + $0x20] sm:$0xff] }
  0x49   :  { %1294 = vmatpush2.bf16.msra.mxu0 %v3397_v47  ;;  %v3476_v47 = vld [vmem:[#allocation2 + $0xc] ss:$16 sps:$4 sm:$0xff]  }
  0x4a   :  { %1335 = vmatpush2.bf16.msra.mxu1 %v3398_v48  ;;  %1295 = vmatprep.subr.bf16.mxu0 %v3399_v51  ;;  %v3479_v48 = vld [vmem:[#allocation2 + $0x5c4] ss:$16 sps:$4 sm:$0xff]   ;;  %v3482_v51 = vld [vmem:[#allocation2 + $0x1ec] ss:$16 sps:$4 sm:$0xff]  }
  0x4b   :  { %1336 = vmatprep.subr.bf16.mxu1 %v3401_v53  ;;  %v3485_v53 = vld [vmem:[#allocation2 + $0x5a4] ss:$16 sps:$4 sm:$0xff]  }
  0x4d   :  { %1296 = vmatpush2.bf16.msra.mxu0 %v3403_v54  ;;  %v3480_v54 = vld [vmem:[#allocation2 + $0x1e8] ss:$16 sps:$4 sm:$0xff]  }
  0x4e   :  { %1337 = vmatpush2.bf16.msra.mxu1 %v3404_v55  ;;  %1297 = vmatprep.subr.bf16.mxu0 %v3405_v56  ;;  %v3483_v55 = vld [vmem:[#allocation2 + $0x5a0] ss:$16 sps:$4 sm:$0xff]   ;;  %v3488_v56 = vld [vmem:[#allocation2 + $0x1cc] ss:$16 sps:$4 sm:$0xff]  }
  0x4f   :  { %1338 = vmatprep.subr.bf16.mxu1 %v3407_v57  ;;  %v3491_v57 = vld [vmem:[#allocation2 + $0x584] ss:$16 sps:$4 sm:$0xff]  }
  0x51   :  { %1298 = vmatpush2.bf16.msra.mxu0 %v3409_v58  ;;  %v3486_v58 = vld [vmem:[#allocation2 + $0x1c8] ss:$16 sps:$4 sm:$0xff]  }
  0x52   :  { %1339 = vmatpush2.bf16.msra.mxu1 %v3410_v59  ;;  %1299 = vmatprep.subr.bf16.mxu0 %v3411_v60  ;;  %v3489_v59 = vld [vmem:[#allocation2 + $0x580] ss:$16 sps:$4 sm:$0xff]   ;;  %v3494_v60 = vld [vmem:[#allocation2 + $0x1ac] ss:$16 sps:$4 sm:$0xff]  }
  0x53   :  { %1340 = vmatprep.subr.bf16.mxu1 %v3413_v61  ;;  %v3497_v61 = vld [vmem:[#allocation2 + $0x564] ss:$16 sps:$4 sm:$0xff]  }
  0x55   :  { %1300 = vmatpush2.bf16.msra.mxu0 %v3415_v62  ;;  %v3492_v62 = vld [vmem:[#allocation2 + $0x1a8] ss:$16 sps:$4 sm:$0xff]  }
  0x56   :  { %1341 = vmatpush2.bf16.msra.mxu1 %v3416_v63  ;;  %1301 = vmatprep.subr.bf16.mxu0 %v3417_v0  ;;  %v3495_v63 = vld [vmem:[#allocation2 + $0x560] ss:$16 sps:$4 sm:$0xff]   ;;  %v3500_v0 = vld [vmem:[#allocation2 + $0x18c] ss:$16 sps:$4 sm:$0xff]  }
  0x57   :  { %1342 = vmatprep.subr.bf16.mxu1 %v3419_v1  ;;  %v3503_v1 = vld [vmem:[#allocation2 + $0x544] ss:$16 sps:$4 sm:$0xff]  }
  0x59   :  { %1302 = vmatpush2.bf16.msra.mxu0 %v3421_v2  ;;  %v3498_v2 = vld [vmem:[#allocation2 + $0x188] ss:$16 sps:$4 sm:$0xff]  }
  0x5a   :  { %1343 = vmatpush2.bf16.msra.mxu1 %v3422_v3  ;;  %1353 = vmatprep.subr.bf16.mxu0 %v3425_v6  ;;  %v3501_v3 = vld [vmem:[#allocation2 + $0x540] ss:$16 sps:$4 sm:$0xff]   ;;  %v3504_v6 = vld [vmem:[#allocation2 + $0x168] ss:$16 sps:$4 sm:$0xff]  }
  0x5b   :  { %1408 = vmatprep.subr.bf16.mxu1 %v3428_v7  ;;  %v3507_v7 = vld [vmem:[#allocation2 + $0x520] ss:$16 sps:$4 sm:$0xff]  }
  0x5c   :  { %1304 = vmatmul.mubr.bf16.vlgmr.msra.gmra.mxu0 %v3958_v8 }
  0x5d   :  { %1345 = vmatmul.mubr.bf16.vlgmr.msra.gmra.mxu1 %v3960_v9  ;;  %1354 = vmatpush1.bf16.msra.mxu0 %v3423_v10  ;;  %v3512_v10 = vld [vmem:[#allocation2 + $0x14c] ss:$16 sps:$4 sm:$0xff]  }
  0x5e   :  { %1409 = vmatpush1.bf16.msra.mxu1 %v3426_v11  ;;  %1355 = vmatprep.subr.bf16.mxu0 %v3431_v12  ;;  %v3515_v11 = vld [vmem:[#allocation2 + $0x504] ss:$16 sps:$4 sm:$0xff]   ;;  %v3510_v12 = vld [vmem:[#allocation2 + $0x148] ss:$16 sps:$4 sm:$0xff]  }
  0x5f   :  { %1426 = vmatprep.mubr.bf16.mxu1 %v3893_v16  ;;  %1435 = vmatprep.subr.bf16.mxu1 %v3434_v13  ;;  %v3513_v13 = vld [vmem:[#allocation2 + $0x500] ss:$16 sps:$4 sm:$0xff]  }
  0x60   :  { %1385 = vmatprep.mubr.bf16.mxu0 %v3976_v36 }
  0x61   :  { %1356 = vmatpush1.bf16.msra.mxu0 %v3429_v14  ;;  %v3518_v14 = vld [vmem:[#allocation2 + $0x12c] ss:$16 sps:$4 sm:$0xff]  }
  0x62   :  { %1357 = vmatprep.subr.bf16.mxu0 %v3437_v17  ;;  %v3521_v17 = vld [vmem:[#allocation2 + $0x2ec] ss:$16 sps:$4 sm:$0xff]  }
  0x65   :  { %3115 = vmatmul.mubr.msk.bf16.vlgmr.msra.gmra.mxu1 %vm1267_vm0, %v3968_v19  ;;  %1358 = vmatpush1.bf16.msra.mxu0 %v3435_v20  ;;  %v3982_v20 = vpack.c.bf16 %v59_v15, %v59_v15  ;;  %v3608_v15 = vld [vmem:[#allocation2 + $0x54c] ss:$16 sps:$4 sm:$0xff]  }
  0x66   :  { %1436 = vmatpush1.bf16.msra.mxu1 %v3432_v18  ;;  %1359 = vmatprep.subr.bf16.mxu0 %v3443_v22  ;;  %v3516_v18 = vld [vmem:[#allocation2 + $0x128] ss:$16 sps:$4 sm:$0xff]   ;;  %v3524_v22 = vld [vmem:[#allocation2 + $0x10c] ss:$16 sps:$4 sm:$0xff]  }
  0x67   :  { %1437 = vmatprep.subr.bf16.mxu1 %v3440_v21  ;;  %1467 = vmatprep.mubr.bf16.mxu1 %v3943_v49  ;;  %v3474_v49 = vld [vmem:[#allocation2 + $0x8] ss:$16 sps:$4 sm:$0xff]  }
  0x68   :  { %v3519_v21 = vld [vmem:[#allocation2 + $0x2e8] ss:$16 sps:$4 sm:$0xff]  }
  0x69   :  { %1360 = vmatpush1.bf16.msra.mxu0 %v3441_v24  ;;  %v3522_v24 = vld [vmem:[#allocation2 + $0x108] ss:$16 sps:$4 sm:$0xff]  }
  0x6a   :  { %1438 = vmatpush1.bf16.msra.mxu1 %v3438_v23  ;;  %1361 = vmatprep.subr.bf16.mxu0 %v3449_v26  ;;  %v3527_v23 = vld [vmem:[#allocation2 + $0x2cc] ss:$16 sps:$4 sm:$0xff]  }
  0x6b   :  { %1439 = vmatprep.subr.bf16.mxu1 %v3446_v25  ;;  %v3525_v25 = vld [vmem:[#allocation2 + $0x2c8] ss:$16 sps:$4 sm:$0xff]   ;;  %v3530_v26 = vld [vmem:[#allocation2 + $0x4ec] ss:$16 sps:$4 sm:$0xff]  }
  0x6d   :  { %1362 = vmatpush1.bf16.msra.mxu0 %v3447_v28  ;;  %v3528_v28 = vld [vmem:[#allocation2 + $0x4e8] ss:$16 sps:$4 sm:$0xff]  }
  0x6e   :  { %1440 = vmatpush1.bf16.msra.mxu1 %v3444_v27  ;;  %1363 = vmatprep.subr.bf16.mxu0 %v3455_v30  ;;  %v3533_v27 = vld [vmem:[#allocation2 + $0x2ac] ss:$16 sps:$4 sm:$0xff]  }
  0x6f   :  { %1441 = vmatprep.subr.bf16.mxu1 %v3452_v29  ;;  %v3531_v29 = vld [vmem:[#allocation2 + $0x2a8] ss:$16 sps:$4 sm:$0xff]   ;;  %v3536_v30 = vld [vmem:[#allocation2 + $0x4cc] ss:$16 sps:$4 sm:$0xff]  }
  0x71   :  { %1364 = vmatpush1.bf16.msra.mxu0 %v3453_v32  ;;  %v3534_v32 = vld [vmem:[#allocation2 + $0x4c8] ss:$16 sps:$4 sm:$0xff]  }
  0x72   :  { %1442 = vmatpush1.bf16.msra.mxu1 %v3450_v31  ;;  %1365 = vmatprep.subr.bf16.mxu0 %v3461_v34  ;;  %v3539_v31 = vld [vmem:[#allocation2 + $0x28c] ss:$16 sps:$4 sm:$0xff]  }
  0x73   :  { %1443 = vmatprep.subr.bf16.mxu1 %v3458_v33  ;;  %v3537_v33 = vld [vmem:[#allocation2 + $0x288] ss:$16 sps:$4 sm:$0xff]   ;;  %v3542_v34 = vld [vmem:[#allocation2 + $0x4ac] ss:$16 sps:$4 sm:$0xff]  }
  0x75   :  { %1366 = vmatpush1.bf16.msra.mxu0 %v3459_v38  ;;  %v3543_v38 = vld [vmem:[#allocation2 + $0x268] ss:$16 sps:$4 sm:$0xff]  }
  0x76   :  { %1444 = vmatpush1.bf16.msra.mxu1 %v3456_v37  ;;  %1367 = vmatprep.subr.bf16.mxu0 %v3467_v40  ;;  %v3540_v37 = vld [vmem:[#allocation2 + $0x4a8] ss:$16 sps:$4 sm:$0xff]  }
  0x77   :  { %1445 = vmatprep.subr.bf16.mxu1 %v3464_v39  ;;  %v3551_v39 = vld [vmem:[#allocation2 + $0x24c] ss:$16 sps:$4 sm:$0xff]   ;;  %v3546_v40 = vld [vmem:[#allocation2 + $0x488] ss:$16 sps:$4 sm:$0xff]  }
  0x79   :  { %1368 = vmatpush1.bf16.msra.mxu0 %v3465_v42  ;;  %v3557_v42 = vld [vmem:[#allocation2 + $0x22c] ss:$16 sps:$4 sm:$0xff]  }
  0x7a   :  { %1446 = vmatpush1.bf16.msra.mxu1 %v3462_v41  ;;  %1369 = vmatprep.subr.bf16.mxu0 %v3473_v44  ;;  %v3554_v41 = vld [vmem:[#allocation2 + $0x46c] ss:$16 sps:$4 sm:$0xff]   ;;  %v3555_v44 = vld [vmem:[#allocation2 + $0x228] ss:$16 sps:$4 sm:$0xff]  }
  0x7b   :  { %1447 = vmatprep.subr.bf16.mxu1 %v3470_v43  ;;  %v3552_v43 = vld [vmem:[#allocation2 + $0x468] ss:$16 sps:$4 sm:$0xff]  }
  0x7d   :  { %1370 = vmatpush2.bf16.msra.mxu0 %v3471_v46  ;;  %v3558_v46 = vld [vmem:[#allocation2 + $0x448] ss:$16 sps:$4 sm:$0xff]  }
  0x7e   :  { %1448 = vmatpush1.bf16.msra.mxu1 %v3468_v45  ;;  %1371 = vmatprep.subr.bf16.mxu0 %v3479_v48  ;;  %v3563_v45 = vld [vmem:[#allocation2 + $0x20c] ss:$16 sps:$4 sm:$0xff]  }
  0x7f   :  { %1449 = vmatprep.subr.bf16.mxu1 %v3476_v47  ;;  %v3561_v47 = vld [vmem:[#allocation2 + $0x208] ss:$16 sps:$4 sm:$0xff]   ;;  %v3566_v48 = vld [vmem:[#allocation2 + $0x42c] ss:$16 sps:$4 sm:$0xff]  }
  0x81   :  { %1372 = vmatpush2.bf16.msra.mxu0 %v3477_v50  ;;  %v3564_v50 = vld [vmem:[#allocation2 + $0x428] ss:$16 sps:$4 sm:$0xff]  }
  0x82   :  { %1450 = vmatpush1.bf16.msra.mxu1 %v3474_v49  ;;  %1373 = vmatprep.subr.bf16.mxu0 %v3485_v53  ;;  %v3569_v49 = vld [vmem:[#allocation2 + $0x3ec] ss:$16 sps:$4 sm:$0xff]  }
  0x83   :  { %1451 = vmatprep.subr.bf16.mxu1 %v3482_v51  ;;  %v3567_v51 = vld [vmem:[#allocation2 + $0x3e8] ss:$16 sps:$4 sm:$0xff]   ;;  %v3572_v53 = vld [vmem:[#allocation2 + $0x40c] ss:$16 sps:$4 sm:$0xff]  }
  0x85   :  { %1374 = vmatpush2.bf16.msra.mxu0 %v3483_v55  ;;  %v3570_v55 = vld [vmem:[#allocation2 + $0x408] ss:$16 sps:$4 sm:$0xff]  }
  0x86   :  { %1452 = vmatpush2.bf16.msra.mxu1 %v3480_v54  ;;  %1375 = vmatprep.subr.bf16.mxu0 %v3491_v57  ;;  %v3575_v54 = vld [vmem:[#allocation2 + $0x3cc] ss:$16 sps:$4 sm:$0xff]  }
  0x87   :  { %1453 = vmatprep.subr.bf16.mxu1 %v3488_v56  ;;  %v3573_v56 = vld [vmem:[#allocation2 + $0x3c8] ss:$16 sps:$4 sm:$0xff]   ;;  %v3578_v57 = vld [vmem:[#allocation2 + $0x5ec] ss:$16 sps:$4 sm:$0xff]  }
  0x89   :  { %1376 = vmatpush2.bf16.msra.mxu0 %v3489_v59  ;;  %v3576_v59 = vld [vmem:[#allocation2 + $0x5e8] ss:$16 sps:$4 sm:$0xff]  }
  0x8a   :  { %1454 = vmatpush2.bf16.msra.mxu1 %v3486_v58  ;;  %1377 = vmatprep.subr.bf16.mxu0 %v3497_v61  ;;  %v3581_v58 = vld [vmem:[#allocation2 + $0x3ac] ss:$16 sps:$4 sm:$0xff]  }
  0x8b   :  { %1455 = vmatprep.subr.bf16.mxu1 %v3494_v60  ;;  %v3579_v60 = vld [vmem:[#allocation2 + $0x3a8] ss:$16 sps:$4 sm:$0xff]   ;;  %v3584_v61 = vld [vmem:[#allocation2 + $0x5cc] ss:$16 sps:$4 sm:$0xff]  }
  0x8d   :  { %1378 = vmatpush2.bf16.msra.mxu0 %v3495_v63  ;;  %v3582_v63 = vld [vmem:[#allocation2 + $0x5c8] ss:$16 sps:$4 sm:$0xff]  }
  0x8e   :  { %1456 = vmatpush2.bf16.msra.mxu1 %v3492_v62  ;;  %1379 = vmatprep.subr.bf16.mxu0 %v3503_v1  ;;  %v3587_v62 = vld [vmem:[#allocation2 + $0x38c] ss:$16 sps:$4 sm:$0xff]  }
  0x8f   :  { %1457 = vmatprep.subr.bf16.mxu1 %v3500_v0  ;;  %v3585_v0 = vld [vmem:[#allocation2 + $0x388] ss:$16 sps:$4 sm:$0xff]   ;;  %v3590_v1 = vld [vmem:[#allocation2 + $0x5ac] ss:$16 sps:$4 sm:$0xff]  }
  0x91   :  { %1380 = vmatpush2.bf16.msra.mxu0 %v3501_v3  ;;  %v3588_v3 = vld [vmem:[#allocation2 + $0x5a8] ss:$16 sps:$4 sm:$0xff]  }
  0x92   :  { %1458 = vmatpush2.bf16.msra.mxu1 %v3498_v2  ;;  %1381 = vmatprep.subr.bf16.mxu0 %v3509_v5  ;;  %v3593_v2 = vld [vmem:[#allocation2 + $0x36c] ss:$16 sps:$4 sm:$0xff]  }
  0x93   :  { %1459 = vmatprep.subr.bf16.mxu1 %v3506_v4  ;;  %v3591_v4 = vld [vmem:[#allocation2 + $0x368] ss:$16 sps:$4 sm:$0xff]   ;;  %v3596_v5 = vld [vmem:[#allocation2 + $0x58c] ss:$16 sps:$4 sm:$0xff]  }
  0x95   :  { %1382 = vmatpush2.bf16.msra.mxu0 %v3507_v7  ;;  %v3594_v7 = vld [vmem:[#allocation2 + $0x588] ss:$16 sps:$4 sm:$0xff]  }
  0x96   :  { %1460 = vmatpush2.bf16.msra.mxu1 %v3504_v6  ;;  %1383 = vmatprep.subr.bf16.mxu0 %v3515_v11  ;;  %v3599_v6 = vld [vmem:[#allocation2 + $0x34c] ss:$16 sps:$4 sm:$0xff]  }
  0x97   :  { %1461 = vmatprep.subr.bf16.mxu1 %v3512_v10  ;;  %v3597_v10 = vld [vmem:[#allocation2 + $0x348] ss:$16 sps:$4 sm:$0xff]   ;;  %v3602_v11 = vld [vmem:[#allocation2 + $0x56c] ss:$16 sps:$4 sm:$0xff]  }
  0x99   :  { %1384 = vmatpush2.bf16.msra.mxu0 %v3513_v13  ;;  %v3600_v13 = vld [vmem:[#allocation2 + $0x568] ss:$16 sps:$4 sm:$0xff]  }
  0x9a   :  { %1462 = vmatpush2.bf16.msra.mxu1 %v3510_v12  ;;  %1476 = vmatprep.subr.bf16.mxu0 %v3521_v17  ;;  %v3605_v12 = vld [vmem:[#allocation2 + $0x32c] ss:$16 sps:$4 sm:$0xff]  }
  0x9b   :  { %1463 = vmatprep.subr.bf16.mxu1 %v3518_v14  ;;  %v3603_v14 = vld [vmem:[#allocation2 + $0x328] ss:$16 sps:$4 sm:$0xff]   ;;  %v3611_v17 = vld [vmem:[#allocation2 + $0x30c] ss:$16 sps:$4 sm:$0xff]  }
  0x9c   :  { %1386 = vmatmul.mubr.bf16.vlgmr.msra.gmra.mxu0 %v3982_v20 }
  0x9d   :  { %1477 = vmatpush1.bf16.msra.mxu0 %v3519_v21  ;;  %1508 = vmatprep.mubr.bf16.mxu0 %v3948_v52  ;;  %v3548_v52 = vld [vmem:[#allocation2 + $0x48c] ss:$16 sps:$4 sm:$0xff]   ;;  %v3609_v21 = vld [vmem:[#allocation2 + $0x308] ss:$16 sps:$4 sm:$0xff]  }
  0x9e   :  { %1464 = vmatpush2.bf16.msra.mxu1 %v3516_v18  ;;  %1478 = vmatprep.subr.bf16.mxu0 %v3527_v23  ;;  %v3606_v18 = vld [vmem:[#allocation2 + $0x548] ss:$16 sps:$4 sm:$0xff]   ;;  %v3617_v23 = vld [vmem:[#allocation2 + $0x60c] ss:$16 sps:$4 sm:$0xff]  }
  0x9f   :  { %1465 = vmatprep.subr.bf16.mxu1 %v3524_v22  ;;  %v3614_v22 = vld [vmem:[#allocation2 + $0x52c] ss:$16 sps:$4 sm:$0xff]  }
  0xa1   :  { %1479 = vmatpush1.bf16.msra.mxu0 %v3525_v25  ;;  %v3615_v25 = vld [vmem:[#allocation2 + $0x608] ss:$16 sps:$4 sm:$0xff]  }
  0xa2   :  { %1466 = vmatpush2.bf16.msra.mxu1 %v3522_v24  ;;  %1480 = vmatprep.subr.bf16.mxu0 %v3533_v27  ;;  %v3612_v24 = vld [vmem:[#allocation2 + $0x528] ss:$16 sps:$4 sm:$0xff]   ;;  %v3623_v27 = vld [vmem:[#allocation4 + $0xe4] ss:$16 sps:$4 sm:$0xff]  }
  0xa3   :  { %1517 = vmatprep.subr.bf16.mxu1 %v3530_v26  ;;  %v3620_v26 = vld [vmem:[#allocation2 + $0x50c] ss:$16 sps:$4 sm:$0xff]  }
  0xa5   :  { %1468 = vmatmul.mubr.bf16.vlgmr.msra.gmra.mxu1 %v3958_v8  ;;  %1481 = vmatpush1.bf16.msra.mxu0 %v3531_v29  ;;  %v3549_v8 = vld [vmem:[#allocation2 + $0x248] ss:$16 sps:$4 sm:$0xff]   ;;  %v3621_v29 = vld [vmem:[#allocation4 + $0xe0] ss:$16 sps:$4 sm:$0xff]  }
  0xa6   :  { %1518 = vmatpush1.bf16.msra.mxu1 %v3528_v28  ;;  %1482 = vmatprep.subr.bf16.mxu0 %v3539_v31  ;;  %v3618_v28 = vld [vmem:[#allocation2 + $0x508] ss:$16 sps:$4 sm:$0xff]   ;;  %v3624_v31 = vld [vmem:[#allocation4 + $0xc0] ss:$16 sps:$4 sm:$0xff]  }
  0xa7   :  { %1519 = vmatprep.subr.bf16.mxu1 %v3536_v30  ;;  %1549 = vmatprep.mubr.bf16.mxu1 %v3976_v36  ;;  %v3560_v36 = vld [vmem:[#allocation2 + $0x44c] ss:$16 sps:$4 sm:$0xff]   ;;  %v3626_v30 = vld [vmem:[#allocation4 + $0xc4] ss:$16 sps:$4 sm:$0xff]  }
  0xa9   :  { %1483 = vmatpush1.bf16.msra.mxu0 %v3537_v33  ;;  %v3627_v33 = vld [vmem:[#allocation4 + $0xa0] ss:$16 sps:$4 sm:$0xff]  }
  0xaa   :  { %1520 = vmatpush1.bf16.msra.mxu1 %v3534_v32  ;;  %1484 = vmatprep.subr.bf16.mxu0 %v3545_v35  ;;  %v3629_v32 = vld [vmem:[#allocation4 + $0xa4] ss:$16 sps:$4 sm:$0xff]  }
  0xab   :  { %1521 = vmatprep.subr.bf16.mxu1 %v3542_v34  ;;  %v3630_v34 = vld [vmem:[#allocation4 + $0x80] ss:$16 sps:$4 sm:$0xff]   ;;  %v3677_v35 = vld [vmem:[#allocation4 + $0x2e4] ss:$16 sps:$4 sm:$0xff]  }
  0xad   :  { %1485 = vmatpush1.bf16.msra.mxu0 %v3543_v38  ;;  %v3681_v38 = vld [vmem:[#allocation4 + $0x2c0] ss:$16 sps:$4 sm:$0xff]  }
  0xae   :  { %1522 = vmatpush1.bf16.msra.mxu1 %v3540_v37  ;;  %1486 = vmatprep.subr.bf16.mxu0 %v3551_v39  ;;  %v3635_v37 = vld [vmem:[#allocation4 + $0x64] ss:$16 sps:$4 sm:$0xff]   ;;  %v3636_v39 = vld [vmem:[#allocation4 + $0x40] ss:$16 sps:$4 sm:$0xff]  }
  0xaf   :  { %1523 = vmatprep.subr.bf16.mxu1 %v3548_v52  ;;  %v3683_v52 = vld [vmem:[#allocation4 + $0x2c4] ss:$16 sps:$4 sm:$0xff]  }
  0xb1   :  { %1487 = vmatpush1.bf16.msra.mxu0 %v3549_v8  ;;  %v3689_v8 = vld [vmem:[#allocation4 + $0x2a4] ss:$16 sps:$4 sm:$0xff]  }
  0xb2   :  { %1524 = vmatpush1.bf16.msra.mxu1 %v3546_v40  ;;  %1488 = vmatprep.subr.bf16.mxu0 %v3557_v42  ;;  %v3687_v40 = vld [vmem:[#allocation4 + $0x2a0] ss:$16 sps:$4 sm:$0xff]  }
  0xb3   :  { %1525 = vmatprep.subr.bf16.mxu1 %v3554_v41  ;;  %v3641_v41 = vld [vmem:[#allocation4 + $0x24] ss:$16 sps:$4 sm:$0xff]   ;;  %v3639_v42 = vld [vmem:[#allocation4 + $0x20] ss:$16 sps:$4 sm:$0xff]  }
  0xb5   :  { %1489 = vmatpush1.bf16.msra.mxu0 %v3555_v44  ;;  %v3695_v44 = vld [vmem:[#allocation4 + $0x284] ss:$16 sps:$4 sm:$0xff]  }
  0xb6   :  { %1526 = vmatpush1.bf16.msra.mxu1 %v3552_v43  ;;  %1490 = vmatprep.subr.bf16.mxu0 %v3563_v45  ;;  %v3693_v43 = vld [vmem:[#allocation4 + $0x280] ss:$16 sps:$4 sm:$0xff]  }
  0xb7   :  { %1527 = vmatprep.subr.bf16.mxu1 %v3560_v36  ;;  %v3644_v36 = vld [vmem:[#allocation4 + $0x4] ss:$16 sps:$4 sm:$0xff]   ;;  %v3642_v45 = vld [vmem:[#allocation4] ss:$16 sps:$4 sm:$0xff]  }
  0xb9   :  { %1491 = vmatpush1.bf16.msra.mxu0 %v3561_v47  ;;  %v3701_v47 = vld [vmem:[#allocation4 + $0x264] ss:$16 sps:$4 sm:$0xff]  }
  0xba   :  { %1528 = vmatpush1.bf16.msra.mxu1 %v3558_v46  ;;  %1492 = vmatprep.subr.bf16.mxu0 %v3569_v49  ;;  %v3699_v46 = vld [vmem:[#allocation4 + $0x260] ss:$16 sps:$4 sm:$0xff]  }
  0xbb   :  { %1529 = vmatprep.subr.bf16.mxu1 %v3566_v48  ;;  %v3647_v48 = vld [vmem:[#allocation4 + $0x1e4] ss:$16 sps:$4 sm:$0xff]   ;;  %v3645_v49 = vld [vmem:[#allocation4 + $0x1e0] ss:$16 sps:$4 sm:$0xff]  }
  0xbd   :  { %1493 = vmatpush2.bf16.msra.mxu0 %v3567_v51  ;;  %v3707_v51 = vld [vmem:[#allocation4 + $0x244] ss:$16 sps:$4 sm:$0xff]  }
  0xbe   :  { %1530 = vmatpush1.bf16.msra.mxu1 %v3564_v50  ;;  %1494 = vmatprep.subr.bf16.mxu0 %v3575_v54  ;;  %v3705_v50 = vld [vmem:[#allocation4 + $0x240] ss:$16 sps:$4 sm:$0xff]  }
  0xbf   :  { %1531 = vmatprep.subr.bf16.mxu1 %v3572_v53  ;;  %v3650_v53 = vld [vmem:[#allocation4 + $0x1c4] ss:$16 sps:$4 sm:$0xff]   ;;  %v3648_v54 = vld [vmem:[#allocation4 + $0x1c0] ss:$16 sps:$4 sm:$0xff]  }
  0xc1   :  { %1495 = vmatpush2.bf16.msra.mxu0 %v3573_v56  ;;  %v3713_v56 = vld [vmem:[#allocation4 + $0x224] ss:$16 sps:$4 sm:$0xff]  }
  0xc2   :  { %1532 = vmatpush1.bf16.msra.mxu1 %v3570_v55  ;;  %1496 = vmatprep.subr.bf16.mxu0 %v3581_v58  ;;  %v3711_v55 = vld [vmem:[#allocation4 + $0x220] ss:$16 sps:$4 sm:$0xff]  }
  0xc3   :  { %1533 = vmatprep.subr.bf16.mxu1 %v3578_v57  ;;  %v3653_v57 = vld [vmem:[#allocation4 + $0x1a4] ss:$16 sps:$4 sm:$0xff]   ;;  %v3651_v58 = vld [vmem:[#allocation4 + $0x1a0] ss:$16 sps:$4 sm:$0xff]  }
  0xc5   :  { %1497 = vmatpush2.bf16.msra.mxu0 %v3579_v60  ;;  %v3719_v60 = vld [vmem:[#allocation4 + $0x204] ss:$16 sps:$4 sm:$0xff]  }
  0xc6   :  { %1534 = vmatpush2.bf16.msra.mxu1 %v3576_v59  ;;  %1498 = vmatprep.subr.bf16.mxu0 %v3587_v62  ;;  %v3717_v59 = vld [vmem:[#allocation4 + $0x200] ss:$16 sps:$4 sm:$0xff]  }
  0xc7   :  { %1535 = vmatprep.subr.bf16.mxu1 %v3584_v61  ;;  %v3656_v61 = vld [vmem:[#allocation4 + $0x184] ss:$16 sps:$4 sm:$0xff]   ;;  %v3654_v62 = vld [vmem:[#allocation4 + $0x180] ss:$16 sps:$4 sm:$0xff]  }
  0xc9   :  { %1499 = vmatpush2.bf16.msra.mxu0 %v3585_v0  ;;  %v3725_v0 = vld [vmem:[#allocation4 + $0x3e4] ss:$16 sps:$4 sm:$0xff]  }
  0xca   :  { %1536 = vmatpush2.bf16.msra.mxu1 %v3582_v63  ;;  %1500 = vmatprep.subr.bf16.mxu0 %v3593_v2  ;;  %v3723_v63 = vld [vmem:[#allocation4 + $0x3e0] ss:$16 sps:$4 sm:$0xff]  }
  0xcb   :  { %1537 = vmatprep.subr.bf16.mxu1 %v3590_v1  ;;  %v3659_v1 = vld [vmem:[#allocation4 + $0x164] ss:$16 sps:$4 sm:$0xff]   ;;  %v3657_v2 = vld [vmem:[#allocation4 + $0x160] ss:$16 sps:$4 sm:$0xff]  }
  0xcd   :  { %1501 = vmatpush2.bf16.msra.mxu0 %v3591_v4  ;;  %v3731_v4 = vld [vmem:[#allocation4 + $0x3c4] ss:$16 sps:$4 sm:$0xff]  }
  0xce   :  { %1538 = vmatpush2.bf16.msra.mxu1 %v3588_v3  ;;  %1502 = vmatprep.subr.bf16.mxu0 %v3599_v6  ;;  %v3729_v3 = vld [vmem:[#allocation4 + $0x3c0] ss:$16 sps:$4 sm:$0xff]  }
  0xcf   :  { %1539 = vmatprep.subr.bf16.mxu1 %v3596_v5  ;;  %v3662_v5 = vld [vmem:[#allocation4 + $0x144] ss:$16 sps:$4 sm:$0xff]   ;;  %v3660_v6 = vld [vmem:[#allocation4 + $0x140] ss:$16 sps:$4 sm:$0xff]  }
  0xd1   :  { %1503 = vmatpush2.bf16.msra.mxu0 %v3597_v10  ;;  %v3737_v10 = vld [vmem:[#allocation4 + $0x3a4] ss:$16 sps:$4 sm:$0xff]  }
  0xd2   :  { %1540 = vmatpush2.bf16.msra.mxu1 %v3594_v7  ;;  %1504 = vmatprep.subr.bf16.mxu0 %v3605_v12  ;;  %v3735_v7 = vld [vmem:[#allocation4 + $0x3a0] ss:$16 sps:$4 sm:$0xff]  }
  0xd3   :  { %1541 = vmatprep.subr.bf16.mxu1 %v3602_v11  ;;  %v3665_v11 = vld [vmem:[#allocation4 + $0x124] ss:$16 sps:$4 sm:$0xff]   ;;  %v3663_v12 = vld [vmem:[#allocation4 + $0x120] ss:$16 sps:$4 sm:$0xff]  }
  0xd5   :  { %1505 = vmatpush2.bf16.msra.mxu0 %v3603_v14  ;;  %v3743_v14 = vld [vmem:[#allocation4 + $0x384] ss:$16 sps:$4 sm:$0xff]  }
  0xd6   :  { %1542 = vmatpush2.bf16.msra.mxu1 %v3600_v13  ;;  %1506 = vmatprep.subr.bf16.mxu0 %v3611_v17  ;;  %v3741_v13 = vld [vmem:[#allocation4 + $0x380] ss:$16 sps:$4 sm:$0xff]  }
  0xd7   :  { %1543 = vmatprep.subr.bf16.mxu1 %v3608_v15  ;;  %v3668_v15 = vld [vmem:[#allocation4 + $0x104] ss:$16 sps:$4 sm:$0xff]  }
  0xd9   :  { %1507 = vmatpush2.bf16.msra.mxu0 %v3609_v21  ;;  %v3666_v21 = vld [vmem:[#allocation4 + $0x100] ss:$16 sps:$4 sm:$0xff]  }
  0xda   :  { %1544 = vmatpush2.bf16.msra.mxu1 %v3606_v18  ;;  %1572 = vmatprep.subr.bf16.mxu0 %v3617_v23 }
  0xdb   :  { %1545 = vmatprep.subr.bf16.mxu1 %v3614_v22  ;;  %v3749_v22 = vld [vmem:[#allocation4 + $0x364] ss:$16 sps:$4 sm:$0xff]  }
  0xdc   :  { %1509 = vmatmul.mubr.bf16.vlgmr.msra.gmra.mxu0 %v3960_v9  ;;  %v3632_v9 = vld [vmem:[#allocation4 + $0x84] ss:$16 sps:$4 sm:$0xff]  }
  0xdd   :  { %1573 = vmatpush1.bf16.msra.mxu0 %v3615_v25  ;;  %1590 = vmatprep.mubr.bf16.mxu0 %v3893_v16  ;;  %v3675_v16 = vld [vmem:[#allocation4 + $0x2e0] ss:$16 sps:$4 sm:$0xff]   ;;  %v3671_v25 = vld [vmem:[#allocation4 + $0xec] ss:$16 sps:$4 sm:$0xff]  }
  0xde   :  { %1546 = vmatpush2.bf16.msra.mxu1 %v3612_v24  ;;  %2397 = vmatprep.subr.bf16.mxu0 %v3623_v27 }
  0xdf   :  { %1547 = vmatprep.subr.bf16.mxu1 %v3620_v26  ;;  %v3747_v26 = vld [vmem:[#allocation4 + $0x360] ss:$16 sps:$4 sm:$0xff]  }
  0xe2   :  { %1548 = vmatpush2.bf16.msra.mxu1 %v3618_v28 }
  0xe3   :  { %2438 = vmatprep.subr.bf16.mxu1 %v3677_v35 }
  0xe4   :  { %3116 = vmatmul.mubr.msk.bf16.vlgmr.msra.gmra.mxu0 %vm1267_vm0, %v3968_v19  ;;  %v3638_v19 = vld [vmem:[#allocation4 + $0x44] ss:$16 sps:$4 sm:$0xff]  }
  0xe5   :  { %1550 = vmatmul.mubr.bf16.vlgmr.msra.gmra.mxu1 %v3982_v20  ;;  %2398 = vmatpush1.bf16.msra.mxu0 %v3621_v29  ;;  %v3633_v20 = vld [vmem:[#allocation4 + $0x60] ss:$16 sps:$4 sm:$0xff]   ;;  %v3755_v29 = vld [vmem:[#allocation4 + $0x344] ss:$16 sps:$4 sm:$0xff]  }
  0xe6   :  { %2399 = vmatprep.subr.bf16.mxu0 %v3626_v30  ;;  %2439 = vmatpush1.bf16.msra.mxu1 %v3675_v16  ;;  %v3759_v16 = vld [vmem:[#allocation4 + $0x320] ss:$16 sps:$4 sm:$0xff]  }
  0xe7   :  { %2440 = vmatprep.subr.bf16.mxu1 %v3683_v52  ;;  %v3767_v52 = vld [vmem:[#allocation4 + $0x2ec] ss:$16 sps:$4 sm:$0xff]  }
  0xe9   :  { %2400 = vmatpush1.bf16.msra.mxu0 %v3624_v31 }
  0xea   :  { %2401 = vmatprep.subr.bf16.mxu0 %v3629_v32  ;;  %2441 = vmatpush1.bf16.msra.mxu1 %v3681_v38  ;;  %v3753_v32 = vld [vmem:[#allocation4 + $0x340] ss:$16 sps:$4 sm:$0xff]  }
  0xeb   :  { %2442 = vmatprep.subr.bf16.mxu1 %v3689_v8  ;;  %v3762_v38 = vld [vmem:[#allocation4 + $0x300] ss:$16 sps:$4 sm:$0xff]  }
  0xec   :  { %v3999_v8 = vld [vmem:[%s4145_s2] sm:$0xf] }
  0xed   :  { %2402 = vmatpush1.bf16.msra.mxu0 %v3627_v33 }
  0xee   :  { %2403 = vmatprep.subr.bf16.mxu0 %v3632_v9  ;;  %2443 = vmatpush1.bf16.msra.mxu1 %v3687_v40  ;;  %v3761_v9 = vld [vmem:[#allocation4 + $0x324] ss:$16 sps:$4 sm:$0xff]  }
  0xef   :  { %2444 = vmatprep.subr.bf16.mxu1 %v3695_v44 }
  0xf1   :  { %2404 = vmatpush1.bf16.msra.mxu0 %v3630_v34 }
  0xf2   :  { %2405 = vmatprep.subr.bf16.mxu0 %v3635_v37  ;;  %2445 = vmatpush1.bf16.msra.mxu1 %v3693_v43  ;;  %v3764_v37 = vld [vmem:[#allocation4 + $0x304] ss:$16 sps:$4 sm:$0xff]  }
  0xf3   :  { %2446 = vmatprep.subr.bf16.mxu1 %v3701_v47 }
  0xf5   :  { %2406 = vmatpush1.bf16.msra.mxu0 %v3633_v20 }
  0xf6   :  { %2407 = vmatprep.subr.bf16.mxu0 %v3638_v19  ;;  %2447 = vmatpush1.bf16.msra.mxu1 %v3699_v46  ;;  %v267_v19 = vlaneseq }
  0xf7   :  { %2448 = vmatprep.subr.bf16.mxu1 %v3707_v51 }
  0xf9   :  { %2408 = vmatpush1.bf16.msra.mxu0 %v3636_v39  ;;  %v3993_v39 = vshrl.u32 %v267_v19, 7 }
  0xfa   :  { %2409 = vmatprep.subr.bf16.mxu0 %v3641_v41  ;;  %2449 = vmatpush1.bf16.msra.mxu1 %v3705_v50 }
  0xfb   :  { %2450 = vmatprep.subr.bf16.mxu1 %v3713_v56  ;;  %v269_v40 = vsub.s32 0, %v3993_v39  ;;  %v273_v41 = vsub.s32 1, %v3993_v39 }
  0xfd   :  { %2410 = vmatpush1.bf16.msra.mxu0 %v3639_v42  ;;  %v270_v42 = vrot.slane %v3999_v8, %v269_v40  ;;  %v274_v43 = vrot.slane %v3999_v8, %v273_v41 }
  0xfe   :  { %2411 = vmatprep.subr.bf16.mxu0 %v3644_v36  ;;  %2451 = vmatpush1.bf16.msra.mxu1 %v3711_v55 }
  0xff   :  { %2452 = vmatprep.subr.bf16.mxu1 %v3719_v60  ;;  %v3669_v60 = vld [vmem:[#allocation4 + $0xe8] ss:$16 sps:$4 sm:$0xff]  }
 0x101   :  { %2412 = vmatpush1.bf16.msra.mxu0 %v3642_v45 }
 0x102   :  { %2413 = vmatprep.subr.bf16.mxu0 %v3647_v48  ;;  %2453 = vmatpush1.bf16.msra.mxu1 %v3717_v59 }
 0x103   :  { %2454 = vmatprep.subr.bf16.mxu1 %v3725_v0 }
 0x105   :  { %2414 = vmatpush2.bf16.msra.mxu0 %v3645_v49 }
 0x106   :  { %2415 = vmatprep.subr.bf16.mxu0 %v3650_v53  ;;  %2455 = vmatpush2.bf16.msra.mxu1 %v3723_v63  ;;  %v3674_v63 = vld [vmem:[#allocation4 + $0xcc] ss:$16 sps:$4 sm:$0xff]  }
 0x107   :  { %2456 = vmatprep.subr.bf16.mxu1 %v3731_v4  ;;  %v3678_v4 = vld [vmem:[#allocation4 + $0xa8] ss:$16 sps:$4 sm:$0xff]  }
 0x109   :  { %2416 = vmatpush2.bf16.msra.mxu0 %v3648_v54 }
 0x10a   :  { %2417 = vmatprep.subr.bf16.mxu0 %v3653_v57  ;;  %2457 = vmatpush2.bf16.msra.mxu1 %v3729_v3  ;;  %v3680_v3 = vld [vmem:[#allocation4 + $0xac] ss:$16 sps:$4 sm:$0xff]  }
 0x10b   :  { %2458 = vmatprep.subr.bf16.mxu1 %v3737_v10  ;;  %v3690_v10 = vld [vmem:[#allocation4 + $0x68] ss:$16 sps:$4 sm:$0xff]  }
 0x10d   :  { %2418 = vmatpush2.bf16.msra.mxu0 %v3651_v58 }
 0x10e   :  { %2419 = vmatprep.subr.bf16.mxu0 %v3656_v61  ;;  %2459 = vmatpush2.bf16.msra.mxu1 %v3735_v7  ;;  %v3692_v7 = vld [vmem:[#allocation4 + $0x6c] ss:$16 sps:$4 sm:$0xff]  }
 0x10f   :  { %2460 = vmatprep.subr.bf16.mxu1 %v3743_v14  ;;  %v3702_v14 = vld [vmem:[#allocation4 + $0x28] ss:$16 sps:$4 sm:$0xff]  }
 0x111   :  { %2420 = vmatpush2.bf16.msra.mxu0 %v3654_v62 }
 0x112   :  { %2421 = vmatprep.subr.bf16.mxu0 %v3659_v1  ;;  %2461 = vmatpush2.bf16.msra.mxu1 %v3741_v13  ;;  %v3672_v1 = vld [vmem:[#allocation4 + $0xc8] ss:$16 sps:$4 sm:$0xff]   ;;  %v3704_v13 = vld [vmem:[#allocation4 + $0x2c] ss:$16 sps:$4 sm:$0xff]  }
 0x113   :  { %2462 = vmatprep.subr.bf16.mxu1 %v3749_v22  ;;  %v3722_v22 = vld [vmem:[#allocation4 + $0x1cc] ss:$16 sps:$4 sm:$0xff]  }
 0x115   :  { %2422 = vmatpush2.bf16.msra.mxu0 %v3657_v2 }
 0x116   :  { %2423 = vmatprep.subr.bf16.mxu0 %v3662_v5  ;;  %2463 = vmatpush2.bf16.msra.mxu1 %v3747_v26  ;;  %v3686_v5 = vld [vmem:[#allocation4 + $0x8c] ss:$16 sps:$4 sm:$0xff]  }
 0x117   :  { %2464 = vmatprep.subr.bf16.mxu1 %v3755_v29  ;;  %v3734_v26 = vld [vmem:[#allocation4 + $0x18c] ss:$16 sps:$4 sm:$0xff]   ;;  %v3738_v29 = vld [vmem:[#allocation4 + $0x168] ss:$16 sps:$4 sm:$0xff]  }
 0x119   :  { %2424 = vmatpush2.bf16.msra.mxu0 %v3660_v6  ;;  %v3684_v6 = vld [vmem:[#allocation4 + $0x88] ss:$16 sps:$4 sm:$0xff]  }
 0x11a   :  { %2425 = vmatprep.subr.bf16.mxu0 %v3665_v11  ;;  %2465 = vmatpush2.bf16.msra.mxu1 %v3753_v32  ;;  %v3698_v11 = vld [vmem:[#allocation4 + $0x4c] ss:$16 sps:$4 sm:$0xff]   ;;  %v3744_v32 = vld [vmem:[#allocation4 + $0x148] ss:$16 sps:$4 sm:$0xff]  }
 0x11b   :  { %2466 = vmatprep.subr.bf16.mxu1 %v3761_v9  ;;  %v281_v9 = vsub.s32 3, %v3993_v39 }
 0x11c   :  { %v1305_v17 = vpop.f32.mrf.mxu0 }
 0x11d   :  { %v1346_v18 = vpop.f32.mrf.mxu1  ;;  %2426 = vmatpush2.bf16.msra.mxu0 %v3663_v12  ;;  %v1306_v44 = vadd.f32 %v1305_v17, %v270_v42  ;;  %v3696_v12 = vld [vmem:[#allocation4 + $0x48] ss:$16 sps:$4 sm:$0xff]  }
 0x11e   :  { %v1307_v23 = vpop.f32.mrf.mxu0  ;;  %2427 = vmatprep.subr.bf16.mxu0 %v3668_v15  ;;  %2467 = vmatpush2.bf16.msra.mxu1 %v3759_v16  ;;  %v3710_v15 = vld [vmem:[#allocation4 + $0xc] ss:$16 sps:$4 sm:$0xff]   ;;  %v3708_v17 = vld [vmem:[#allocation4 + $0x8] ss:$16 sps:$4 sm:$0xff]  }
 0x11f   :  { %v1348_v24 = vpop.f32.mrf.mxu1  ;;  %2468 = vmatprep.subr.bf16.mxu1 %v3764_v37  ;;  %v1308_v36 = vadd.f32 %v1307_v23, %v274_v43  ;;  %v1347_v45 = vadd.f32 %v1346_v18, %v1306_v44  ;;  %v3716_v18 = vld [vmem:[#allocation4 + $0x1ec] ss:$16 sps:$4 sm:$0xff]   ;;  %v3720_v23 = vld [vmem:[#allocation4 + $0x1c8] ss:$16 sps:$4 sm:$0xff]  }
 0x120   :  { %v1309_v27 = vpop.f32.mrf.mxu0  ;;  %v3756_v42 = vld [vmem:[#allocation4 + $0x108] ss:$16 sps:$4 sm:$0xff]  }
 0x121   :  { %v1350_v28 = vpop.f32.mrf.mxu1  ;;  %2428 = vmatpush2.bf16.msra.mxu0 %v3666_v21  ;;  %v1349_v47 = vadd.f32 %v1348_v24, %v1308_v36  ;;  %v3714_v21 = vld [vmem:[#allocation4 + $0x1e8] ss:$16 sps:$4 sm:$0xff]   ;;  %v3728_v24 = vld [vmem:[#allocation4 + $0x1ac] ss:$16 sps:$4 sm:$0xff]  }
 0x122   :  { %v1310_v30 = vpop.f32.mrf.mxu0  ;;  %2479 = vmatprep.subr.bf16.mxu0 %v3671_v25  ;;  %2469 = vmatpush2.bf16.msra.mxu1 %v3762_v38  ;;  %v3726_v25 = vld [vmem:[#allocation4 + $0x1a8] ss:$16 sps:$4 sm:$0xff]   ;;  %v3740_v28 = vld [vmem:[#allocation4 + $0x16c] ss:$16 sps:$4 sm:$0xff]   ;;  %v282_v38 = vrot.slane %v3999_v8, %v281_v9 }
 0x123   :  { %v1351_v31 = vpop.f32.mrf.mxu1  ;;  %2520 = vmatprep.subr.bf16.mxu1 %v3767_v52  ;;  %v3732_v27 = vld [vmem:[#allocation4 + $0x188] ss:$16 sps:$4 sm:$0xff]   ;;  %v3746_v30 = vld [vmem:[#allocation4 + $0x14c] ss:$16 sps:$4 sm:$0xff]  }
 0x124   :  { %v277_v31 = vsub.s32 2, %v3993_v39 }
 0x125   :  { %v1428_v33 = vpop.f32.mrf.mxu1 }
 0x126   :  { %v278_v16 = vrot.slane %v3999_v8, %v277_v31 }
 0x127   :  { %v1430_v34 = vpop.f32.mrf.mxu1 }
 0x129   :  { %v1432_v35 = vpop.f32.mrf.mxu1 }
 0x12a   :  { %v3750_v35 = vld [vmem:[#allocation4 + $0x128] ss:$16 sps:$4 sm:$0xff]  }
 0x12b   :  { %v1433_v20 = vpop.f32.mrf.mxu1 }
 0x12c   :  { %v3758_v20 = vld [vmem:[#allocation4 + $0x10c] ss:$16 sps:$4 sm:$0xff]  }
 0x15c   :  { %v1387_v46 = vpop.f32.mrf.mxu0 }
 0x15d   :  { %v1388_v48 = vadd.f32 %v1387_v46, %v1347_v45 }
 0x15e   :  { %v1389_v49 = vpop.f32.mrf.mxu0 }
 0x15f   :  { %v1429_v50 = vadd.f32 %v1428_v33, %v1388_v48  ;;  %v1390_v51 = vadd.f32 %v1389_v49, %v1349_v47  ;;  %v3752_v33 = vld [vmem:[#allocation4 + $0x12c] ss:$16 sps:$4 sm:$0xff]  }
 0x160   :  { %v1391_v53 = vpop.f32.mrf.mxu0 }
 0x161   :  { %v1431_v54 = vadd.f32 %v1430_v34, %v1390_v51  ;;  %v1599_v55 = vmax.f32 %v1429_v50, 0.0 }
 0x162   :  { %v1392_v56 = vpop.f32.mrf.mxu0 }
 0x163   :  { %v1600_v57 = vmax.f32 %v1431_v54, 0.0  ;;  %v4010_v61 = vpack.c.bf16 %v1599_v55, %v1599_v55 }
 0x165   :  { %v4008_v58 = vpop.f32.mrf.mxu1  ;;  %v1604_v59 = vpack.c.bf16 %v1600_v57, %v1600_v57 }
 0x166   :  { %v1470_v19 = vadd.f32 %v4008_v58, %v278_v16  ;;  %v3803_v16 = vld [vmem:[#allocation4 + $0x36c] ss:$16 sps:$4 sm:$0xff]  }
 0x167   :  { %v4012_v62 = vpop.f32.mrf.mxu1  ;;  %2429 = vmatprep.mubr.bf16.mxu0 %v1604_v59 }
 0x168   :  { %2430 = vmatmul.mubr.bf16.vlgmr.msra.gmra.mxu0 %v4010_v61  ;;  %v1472_v44 = vadd.f32 %v4012_v62, %v282_v38  ;;  %v3765_v62 = vld [vmem:[#allocation4 + $0x2e8] ss:$16 sps:$4 sm:$0xff]   ;;  %v3809_v38 = vld [vmem:[#allocation4 + $0x32c] ss:$16 sps:$4 sm:$0xff]  }
 0x169   :  { %v1473_v0 = vpop.f32.mrf.mxu1  ;;  %2480 = vmatpush1.bf16.msra.mxu0 %v3669_v60  ;;  %2511 = vmatprep.mubr.bf16.mxu0 %v1604_v59 }
 0x16a   :  { %2481 = vmatprep.subr.bf16.mxu0 %v3674_v63  ;;  %v3770_v0 = vld [vmem:[#allocation4 + $0x2cc] ss:$16 sps:$4 sm:$0xff]  }
 0x16b   :  { %v1474_v2 = vpop.f32.mrf.mxu1 }
 0x16c   :  { %v3814_v2 = vld [vmem:[%s4148_s5 + $0x38] sm:$0xff]  }
 0x16d   :  { %2482 = vmatpush1.bf16.msra.mxu0 %v3672_v1  ;;  %v3813_v1 = vld [vmem:[%s4148_s5 + $0x78] sm:$0xff]  }
 0x16e   :  { %2483 = vmatprep.subr.bf16.mxu0 %v3680_v3  ;;  %v3768_v3 = vld [vmem:[#allocation4 + $0x2c8] ss:$16 sps:$4 sm:$0xff]  }
 0x171   :  { %2484 = vmatpush1.bf16.msra.mxu0 %v3678_v4  ;;  %v3773_v4 = vld [vmem:[#allocation4 + $0x2ac] ss:$16 sps:$4 sm:$0xff]  }
 0x172   :  { %2485 = vmatprep.subr.bf16.mxu0 %v3686_v5  ;;  %v3816_v5 = vld [vmem:[%s4148_s5 + $0x30] sm:$0xff]  }
 0x175   :  { %2486 = vmatpush1.bf16.msra.mxu0 %v3684_v6  ;;  %v3817_v6 = vld [vmem:[%s4148_s5 + $0x68] sm:$0xff]  }
 0x176   :  { %2487 = vmatprep.subr.bf16.mxu0 %v3692_v7  ;;  %v3771_v7 = vld [vmem:[#allocation4 + $0x2a8] ss:$16 sps:$4 sm:$0xff]  }
 0x179   :  { %2488 = vmatpush1.bf16.msra.mxu0 %v3690_v10  ;;  %v3776_v10 = vld [vmem:[#allocation4 + $0x28c] ss:$16 sps:$4 sm:$0xff]  }
 0x17a   :  { %2489 = vmatprep.subr.bf16.mxu0 %v3698_v11  ;;  %v3818_v11 = vld [vmem:[%s4148_s5 + $0x28] sm:$0xff]  }
 0x17d   :  { %2490 = vmatpush1.bf16.msra.mxu0 %v3696_v12  ;;  %v3819_v12 = vld [vmem:[%s4148_s5 + $0x60] sm:$0xff]  }
 0x17e   :  { %2491 = vmatprep.subr.bf16.mxu0 %v3704_v13  ;;  %v3774_v13 = vld [vmem:[#allocation4 + $0x288] ss:$16 sps:$4 sm:$0xff]  }
 0x181   :  { %2492 = vmatpush1.bf16.msra.mxu0 %v3702_v14  ;;  %v3779_v14 = vld [vmem:[#allocation4 + $0x26c] ss:$16 sps:$4 sm:$0xff]  }
 0x182   :  { %2493 = vmatprep.subr.bf16.mxu0 %v3710_v15  ;;  %v3820_v15 = vld [vmem:[%s4148_s5 + $0x20] sm:$0xff]  }
 0x185   :  { %2494 = vmatpush1.bf16.msra.mxu0 %v3708_v17  ;;  %v3777_v17 = vld [vmem:[#allocation4 + $0x268] ss:$16 sps:$4 sm:$0xff]  }
 0x186   :  { %2495 = vmatprep.subr.bf16.mxu0 %v3716_v18  ;;  %v3782_v18 = vld [vmem:[#allocation4 + $0x24c] ss:$16 sps:$4 sm:$0xff]  }
 0x189   :  { %2496 = vmatpush2.bf16.msra.mxu0 %v3714_v21  ;;  %v3780_v21 = vld [vmem:[#allocation4 + $0x248] ss:$16 sps:$4 sm:$0xff]  }
 0x18a   :  { %2497 = vmatprep.subr.bf16.mxu0 %v3722_v22  ;;  %v3785_v22 = vld [vmem:[#allocation4 + $0x22c] ss:$16 sps:$4 sm:$0xff]  }
 0x18d   :  { %2498 = vmatpush2.bf16.msra.mxu0 %v3720_v23  ;;  %v3783_v23 = vld [vmem:[#allocation4 + $0x228] ss:$16 sps:$4 sm:$0xff]  }
 0x18e   :  { %2499 = vmatprep.subr.bf16.mxu0 %v3728_v24  ;;  %v3788_v24 = vld [vmem:[#allocation4 + $0x20c] ss:$16 sps:$4 sm:$0xff]  }
 0x191   :  { %2500 = vmatpush2.bf16.msra.mxu0 %v3726_v25  ;;  %v3786_v25 = vld [vmem:[#allocation4 + $0x208] ss:$16 sps:$4 sm:$0xff]  }
 0x192   :  { %2501 = vmatprep.subr.bf16.mxu0 %v3734_v26  ;;  %v3791_v26 = vld [vmem:[#allocation4 + $0x3ec] ss:$16 sps:$4 sm:$0xff]  }
 0x195   :  { %2502 = vmatpush2.bf16.msra.mxu0 %v3732_v27  ;;  %v3789_v27 = vld [vmem:[#allocation4 + $0x3e8] ss:$16 sps:$4 sm:$0xff]  }
 0x196   :  { %2503 = vmatprep.subr.bf16.mxu0 %v3740_v28  ;;  %v3794_v28 = vld [vmem:[#allocation4 + $0x3cc] ss:$16 sps:$4 sm:$0xff]  }
 0x199   :  { %2504 = vmatpush2.bf16.msra.mxu0 %v3738_v29  ;;  %v3792_v29 = vld [vmem:[#allocation4 + $0x3c8] ss:$16 sps:$4 sm:$0xff]  }
 0x19a   :  { %2505 = vmatprep.subr.bf16.mxu0 %v3746_v30  ;;  %v3797_v30 = vld [vmem:[#allocation4 + $0x3ac] ss:$16 sps:$4 sm:$0xff]  }
 0x19c   :  { %v1510_v34 = vpop.f32.mrf.mxu0 }
 0x19d   :  { %2506 = vmatpush2.bf16.msra.mxu0 %v3744_v32  ;;  %v1511_v36 = vadd.f32 %v1510_v34, %v1470_v19  ;;  %v3795_v32 = vld [vmem:[#allocation4 + $0x3a8] ss:$16 sps:$4 sm:$0xff]   ;;  %v3812_v19 = vld [vmem:[#allocation4 + $0x30c] ss:$16 sps:$4 sm:$0xff]  }
 0x19e   :  { %v1512_v37 = vpop.f32.mrf.mxu0  ;;  %2507 = vmatprep.subr.bf16.mxu0 %v3752_v33  ;;  %v3800_v33 = vld [vmem:[#allocation4 + $0x38c] ss:$16 sps:$4 sm:$0xff]   ;;  %v3798_v34 = vld [vmem:[#allocation4 + $0x388] ss:$16 sps:$4 sm:$0xff]  }
 0x19f   :  { %v1513_v47 = vadd.f32 %v1512_v37, %v1472_v44  ;;  %v3806_v37 = vld [vmem:[#allocation4 + $0x34c] ss:$16 sps:$4 sm:$0xff]  }
 0x1a0   :  { %v1514_v52 = vpop.f32.mrf.mxu0  ;;  %v3822_v44 = vld [vmem:[%s4148_s5 + $0x18] sm:$0xff]  }
 0x1a1   :  { %2508 = vmatpush2.bf16.msra.mxu0 %v3750_v35  ;;  %v3801_v35 = vld [vmem:[#allocation4 + $0x368] ss:$16 sps:$4 sm:$0xff]  }
 0x1a2   :  { %v1515_v43 = vpop.f32.mrf.mxu0  ;;  %2509 = vmatprep.subr.bf16.mxu0 %v3758_v20  ;;  %v3804_v20 = vld [vmem:[#allocation4 + $0x348] ss:$16 sps:$4 sm:$0xff]  }
 0x1a3   :  { %v3807_v52 = vld [vmem:[#allocation4 + $0x328] ss:$16 sps:$4 sm:$0xff]  }
 0x1a4   :  { %v1592_v46 = vpop.f32.mrf.mxu0  ;;  %v3821_v43 = vld [vmem:[%s4148_s5 + $0x58] sm:$0xff]  }
 0x1a5   :  { %v1551_v45 = vpop.f32.mrf.mxu1  ;;  %2510 = vmatpush2.bf16.msra.mxu0 %v3756_v42  ;;  %v3810_v42 = vld [vmem:[#allocation4 + $0x308] ss:$16 sps:$4 sm:$0xff]  }
 0x1a6   :  { %v1552_v48 = vadd.f32 %v1551_v45, %v1511_v36  ;;  %v1594_v50 = vpop.f32.mrf.mxu0  ;;  %3278 = vmatprep.subr.bf16.mxu0 %v3813_v1  ;;  %v3823_v36 = vld [vmem:[%s4148_s5 + $0x50] sm:$0xff]  }
 0x1a7   :  { %v1553_v49 = vpop.f32.mrf.mxu1  ;;  %v3824_v45 = vld [vmem:[%s4148_s5 + $0x10] sm:$0xff]  }
 0x1a8   :  { %v1593_v51 = vadd.f32 %v1592_v46, %v1552_v48  ;;  %v1554_v53 = vadd.f32 %v1553_v49, %v1513_v47  ;;  %2512 = vmatmul.mubr.bf16.vlgmr.msra.gmra.mxu0 %v4010_v61  ;;  %v1596_v54 = vpop.f32.mrf.mxu0  ;;  %v3815_v61 = vld [vmem:[%s4148_s5 + $0x70] sm:$0xff]   ;;  %v3825_v46 = vld [vmem:[%s4148_s5 + $0x48] sm:$0xff]   ;;  %v3827_v48 = vld [vmem:[%s4148_s5 + $0x40] sm:$0xff]  }
 0x1a9   :  { %v1555_v8 = vpop.f32.mrf.mxu1  ;;  %3279 = vmatpush3.bf16.msra.mxu0 %v3814_v2  ;;  %v3826_v47 = vld [vmem:[%s4148_s5 + $0x8] sm:$0xff]   ;;  %v3828_v49 = vld [vmem:[%s4148_s5] sm:$0xff]  }
 0x1aa   :  { %v1595_v55 = vadd.f32 %v1594_v50, %v1554_v53  ;;  %v1601_v56 = vmax.f32 %v1593_v51, 0.0  ;;  %v1597_v58 = vpop.f32.mrf.mxu0  ;;  %3280 = vmatprep.subr.bf16.mxu0 %v3815_v61  ;;  %v3829_v50 = vld [vmem:[%s4148_s5 + $0xf8] sm:$0xff]   ;;  %v3831_v53 = vld [vmem:[%s4148_s5 + $0xf0] sm:$0xff]   ;;  %v3833_v54 = vld [vmem:[%s4148_s5 + $0xe8] sm:$0xff]  }
 0x1ab   :  { %v1556_v57 = vpop.f32.mrf.mxu1  ;;  %v3830_v51 = vld [vmem:[%s4148_s5 + $0xb8] sm:$0xff]   ;;  %v3832_v8 = vld [vmem:[%s4148_s5 + $0xb0] sm:$0xff]   ;;  %v3841_v61 = vld [vmem:[%s4148_s5 + $0xc8] sm:$0xff]  }
 0x1ac   :  { %v1602_v59 = vmax.f32 %v1595_v55, 0.0  ;;  %v4026_v63 = vpack.c.bf16 %v1601_v56, %v1601_v56  ;;  %v3834_v55 = vld [vmem:[%s4148_s5 + $0xa8] sm:$0xff]   ;;  %v3835_v56 = vld [vmem:[%s4148_s5 + $0xe0] sm:$0xff]   ;;  %v3837_v58 = vld [vmem:[%s4148_s5 + $0xd8] sm:$0xff]  }
 0x1ad   :  { %3281 = vmatpush3.bf16.msra.mxu0 %v3816_v5  ;;  %v3836_v57 = vld [vmem:[%s4148_s5 + $0xa0] sm:$0xff]  }
 0x1ae   :  { %v1606_v60 = vpack.c.bf16 %v1602_v59, %v1602_v59  ;;  %3282 = vmatprep.subr.bf16.mxu0 %v3817_v6  ;;  %v3838_v59 = vld [vmem:[%s4148_s5 + $0x98] sm:$0xff]   ;;  %v3844_v5 = vld [vmem:[%s4148_s5 + $0x80] sm:$0xff]  }
 0x1af   :  { %v1735_v6 = vld [vmem:[%s4147_s4] sm:$0xf] }
 0x1b0   :  { %2470 = vmatprep.mubr.bf16.mxu1 %v1606_v60 }
 0x1b1   :  { %2471 = vmatmul.mubr.bf16.vlgmr.msra.gmra.mxu1 %v4026_v63  ;;  %3283 = vmatpush3.bf16.msra.mxu0 %v3818_v11  ;;  %v1740_v11 = vrot.slane %v1735_v6, %v269_v40  ;;  %v1748_v40 = vrot.slane %v1735_v6, %v277_v31 }
 0x1b2   :  { %2521 = vmatpush1.bf16.msra.mxu1 %v3765_v62  ;;  %2552 = vmatprep.mubr.bf16.mxu1 %v1606_v60  ;;  %v3839_v60 = vld [vmem:[%s4148_s5 + $0xd0] sm:$0xff]  }
 0x1b3   :  { %2522 = vmatprep.subr.bf16.mxu1 %v3770_v0  ;;  %3284 = vmatprep.subr.bf16.mxu0 %v3819_v12  ;;  %v3840_v62 = vld [vmem:[%s4148_s5 + $0x90] sm:$0xff]  }
 0x1b5   :  { %3285 = vmatpush3.bf16.msra.mxu0 %v3820_v15 }
 0x1b6   :  { %2523 = vmatpush1.bf16.msra.mxu1 %v3768_v3  ;;  %3286 = vmatprep.subr.bf16.mxu0 %v3821_v43  ;;  %v3842_v3 = vld [vmem:[%s4148_s5 + $0x88] sm:$0xff]  }
 0x1b7   :  { %2524 = vmatprep.subr.bf16.mxu1 %v3773_v4  ;;  %v3843_v4 = vld [vmem:[%s4148_s5 + $0xc0] sm:$0xff]  }
 0x1b9   :  { %3287 = vmatpush3.bf16.msra.mxu0 %v3822_v44 }
 0x1ba   :  { %2525 = vmatpush1.bf16.msra.mxu1 %v3771_v7  ;;  %3288 = vmatprep.subr.bf16.mxu0 %v3823_v36 }
 0x1bb   :  { %2526 = vmatprep.subr.bf16.mxu1 %v3776_v10 }
 0x1bd   :  { %3289 = vmatpush3.bf16.msra.mxu0 %v3824_v45 }
 0x1be   :  { %2527 = vmatpush1.bf16.msra.mxu1 %v3774_v13  ;;  %3290 = vmatprep.subr.bf16.mxu0 %v3825_v46  ;;  %v1744_v13 = vrot.slane %v1735_v6, %v273_v41  ;;  %v1752_v41 = vrot.slane %v1735_v6, %v281_v9  ;;  %v3245_v9 = vld [vmem:[%s4149_s6] ss:$0 sm:$0xff] }
 0x1bf   :  { %2528 = vmatprep.subr.bf16.mxu1 %v3779_v14 }
 0x1c1   :  { %3291 = vmatpush3.bf16.msra.mxu0 %v3826_v47 }
 0x1c2   :  { %2529 = vmatpush1.bf16.msra.mxu1 %v3777_v17  ;;  %3292 = vmatprep.subr.bf16.mxu0 %v3827_v48 }
 0x1c3   :  { %2530 = vmatprep.subr.bf16.mxu1 %v3782_v18 }
 0x1c5   :  { %3293 = vmatpush3.bf16.msra.mxu0 %v3828_v49 }
 0x1c6   :  { %2531 = vmatpush1.bf16.msra.mxu1 %v3780_v21 }
 0x1c7   :  { %2532 = vmatprep.subr.bf16.mxu1 %v3785_v22 }
 0x1ca   :  { %2533 = vmatpush1.bf16.msra.mxu1 %v3783_v23 }
 0x1cb   :  { %2534 = vmatprep.subr.bf16.mxu1 %v3788_v24 }
 0x1ce   :  { %2535 = vmatpush1.bf16.msra.mxu1 %v3786_v25 }
 0x1cf   :  { %2536 = vmatprep.subr.bf16.mxu1 %v3791_v26 }
 0x1d2   :  { %2537 = vmatpush2.bf16.msra.mxu1 %v3789_v27 }
 0x1d3   :  { %2538 = vmatprep.subr.bf16.mxu1 %v3794_v28 }
 0x1d6   :  { %2539 = vmatpush2.bf16.msra.mxu1 %v3792_v29 }
 0x1d7   :  { %2540 = vmatprep.subr.bf16.mxu1 %v3797_v30 }
 0x1da   :  { %2541 = vmatpush2.bf16.msra.mxu1 %v3795_v32 }
 0x1db   :  { %2542 = vmatprep.subr.bf16.mxu1 %v3800_v33 }
 0x1de   :  { %2543 = vmatpush2.bf16.msra.mxu1 %v3798_v34 }
 0x1df   :  { %2544 = vmatprep.subr.bf16.mxu1 %v3803_v16 }
 0x1e2   :  { %2545 = vmatpush2.bf16.msra.mxu1 %v3801_v35 }
 0x1e3   :  { %2546 = vmatprep.subr.bf16.mxu1 %v3806_v37 }
 0x1e6   :  { %2547 = vmatpush2.bf16.msra.mxu1 %v3804_v20 }
 0x1e7   :  { %2548 = vmatprep.subr.bf16.mxu1 %v3809_v38 }
 0x1ea   :  { %2549 = vmatpush2.bf16.msra.mxu1 %v3807_v52 }
 0x1eb   :  { %2550 = vmatprep.subr.bf16.mxu1 %v3812_v19 }
 0x1ee   :  { %2551 = vmatpush2.bf16.msra.mxu1 %v3810_v42 }
 0x1ef   :  { %3300 = vmatprep.subr.bf16.mxu1 %v3829_v50 }
 0x1f1   :  { %2553 = vmatmul.mubr.bf16.vlgmr.msra.gmra.mxu1 %v4026_v63 }
 0x1f2   :  { %3301 = vmatpush3.bf16.msra.mxu1 %v3830_v51 }
 0x1f3   :  { %3302 = vmatprep.subr.bf16.mxu1 %v3831_v53 }
 0x1f6   :  { %3303 = vmatpush3.bf16.msra.mxu1 %v3832_v8 }
 0x1f7   :  { %3304 = vmatprep.subr.bf16.mxu1 %v3833_v54 }
 0x1fa   :  { %3305 = vmatpush3.bf16.msra.mxu1 %v3834_v55 }
 0x1fb   :  { %3306 = vmatprep.subr.bf16.mxu1 %v3835_v56 }
 0x1fe   :  { %3307 = vmatpush3.bf16.msra.mxu1 %v3836_v57 }
 0x1ff   :  { %3308 = vmatprep.subr.bf16.mxu1 %v3837_v58 }
 0x202   :  { %3309 = vmatpush3.bf16.msra.mxu1 %v3838_v59 }
 0x203   :  { %3310 = vmatprep.subr.bf16.mxu1 %v3839_v60 }
 0x206   :  { %3311 = vmatpush3.bf16.msra.mxu1 %v3840_v62 }
 0x207   :  { %3312 = vmatprep.subr.bf16.mxu1 %v3841_v61 }
 0x20a   :  { %3313 = vmatpush3.bf16.msra.mxu1 %v3842_v3 }
 0x20b   :  { %3314 = vmatprep.subr.bf16.mxu1 %v3843_v4 }
 0x20e   :  { %3315 = vmatpush3.bf16.msra.mxu1 %v3844_v5 }
 0x228   :  { %v2431_v63 = vpop.f32.mrf.mxu0 }
 0x229   :  { %v2432_v15 = vadd.f32 %v2431_v63, %v1740_v11 }
 0x22a   :  { %v2433_v0 = vpop.f32.mrf.mxu0 }
 0x22b   :  { %v2434_v18 = vadd.f32 %v2433_v0, %v1744_v13 }
 0x22c   :  { %v2435_v1 = vpop.f32.mrf.mxu0 }
 0x22e   :  { %v2436_v2 = vpop.f32.mrf.mxu0 }
 0x268   :  { %v2513_v7 = vpop.f32.mrf.mxu0 }
 0x269   :  { %v2514_v30 = vadd.f32 %v2513_v7, %v1748_v40 }
 0x26a   :  { %v2515_v10 = vpop.f32.mrf.mxu0 }
 0x26b   :  { %v2516_v33 = vadd.f32 %v2515_v10, %v1752_v41 }
 0x26c   :  { %v2517_v12 = vpop.f32.mrf.mxu0 }
 0x26e   :  { %v2518_v14 = vpop.f32.mrf.mxu0 }
 0x271   :  { %v2472_v17 = vpop.f32.mrf.mxu1 }
 0x272   :  { %v2473_v21 = vadd.f32 %v2472_v17, %v2432_v15 }
 0x273   :  { %v2474_v22 = vpop.f32.mrf.mxu1 }
 0x274   :  { %v2475_v23 = vadd.f32 %v2474_v22, %v2434_v18  ;;  %v2561_v24 = vmax.f32 %v2473_v21, 0.0 }
 0x275   :  { %v2476_v25 = vpop.f32.mrf.mxu1 }
 0x276   :  { %v2562_v26 = vmax.f32 %v2475_v23, 0.0  ;;  %v2565_v29 = vpack.c.bf16 %v2561_v24, %v2561_v24 }
 0x277   :  { %v2477_v27 = vpop.f32.mrf.mxu1 }
 0x278   :  { %v2566_v28 = vpack.c.bf16 %v2562_v26, %v2562_v26 }
 0x27a   :  { %2864 = vmatprep.mubr.bf16.mxu0 %v2566_v28 }
 0x27b   :  { %2865 = vmatmul.mubr.bf16.vlgmr.msra.gmra.mxu0 %v2565_v29 }
 0x2b1   :  { %v2554_v32 = vpop.f32.mrf.mxu1 }
 0x2b2   :  { %v2555_v34 = vadd.f32 %v2554_v32, %v2514_v30 }
 0x2b3   :  { %v2556_v16 = vpop.f32.mrf.mxu1 }
 0x2b4   :  { %v2557_v35 = vadd.f32 %v2556_v16, %v2516_v33  ;;  %v2563_v37 = vmax.f32 %v2555_v34, 0.0 }
 0x2b5   :  { %v2558_v20 = vpop.f32.mrf.mxu1 }
 0x2b6   :  { %v2564_v38 = vmax.f32 %v2557_v35, 0.0  ;;  %v2567_v42 = vpack.c.bf16 %v2563_v37, %v2563_v37 }
 0x2b7   :  { %v2559_v52 = vpop.f32.mrf.mxu1 }
 0x2b8   :  { %v2568_v19 = vpack.c.bf16 %v2564_v38, %v2564_v38 }
 0x2ba   :  { %2904 = vmatprep.mubr.bf16.mxu1 %v2568_v19 }
 0x2bb   :  { %2905 = vmatmul.mubr.bf16.vlgmr.msra.gmra.mxu1 %v2567_v42 }
 0x33b   :  { %v3294_v43 = vpop.f32.mrf.mxu0 }
 0x33d   :  { %v3295_v44 = vpop.f32.mrf.mxu0 }
 0x33e   :  { %v3296_v39 = vadd.f32 %v3295_v44, %v3294_v43 }
 0x33f   :  { %v3297_v31 = vpop.f32.mrf.mxu0 }
 0x340   :  { %v2867_v47 = vadd.f32 %v3296_v39, %v3245_v9 }
 0x341   :  { %v3298_v36 = vpop.f32.mrf.mxu0 }
 0x37b   :  { %v3316_v45 = vpop.f32.mrf.mxu1 }
 0x37d   :  { %v3317_v46 = vpop.f32.mrf.mxu1 }
 0x37e   :  { %v3318_v48 = vadd.f32 %v3317_v46, %v3316_v45 }
 0x37f   :  { %v3319_v49 = vpop.f32.mrf.mxu1 }
 0x380   :  { %v2907_v50 = vadd.f32 %v3318_v48, %v2867_v47 }
 0x381   :  { %v3320_v51 = vpop.f32.mrf.mxu1 }
 0x382   :  { %2912 = vst [vmem:[%s4150_s7] sm:$0xff] %v2907_v50 }
 0x383   :  { %2917 = vsyncpa [#allocation3], 1 }
 0x384   :  { %2918 = vsyncpa [#allocation5], 1 }

</bundles_post_ra>
